<compile_context>
chip_gen: v5e
topology: v5e:2x2
jax: 0.10.0
libtpu: 0.0.40
codegen_flags: <defaults>
</compile_context>

<pallas_src>
import functools

import jax
import jax.numpy as jnp
import numpy as np
from jax.experimental import pallas as pl
from jax.experimental.pallas import tpu as pltpu

_LSTM_ORDER = ("user", "neighbourhood", "product")


def _round_up(x, m):
    return (x + m - 1) // m * m


# ----------------------------------------------------------------------------
# Pallas kernel: the whole (3-LSTM, all-timesteps) forward in one invocation.
# ----------------------------------------------------------------------------
def _fused_lstm_kernel(x_ref, wih_ref, whh_ref, b_ref, out_ref, cn_ref,
                       gin_ref, *, seq_len, batch):
    # x_ref  : (S*B, Hp)    concatenated + zero-padded inputs, row = t*B + b
    # wih_ref: (Hp, 4*Hp)   block-diagonal, gate-fused W_ih^T
    # whh_ref: (Hp, 4*Hp)   block-diagonal, gate-fused W_hh^T
    # b_ref  : (1, 4*Hp)    gate-fused (b_ih + b_hh)
    # out_ref: (S*B, Hp)    h_t for every timestep (lane-dense)
    # cn_ref : (B, Hp)      final cell state
    # gin_ref: (S*B, 4*Hp)  VMEM scratch: precomputed input-side gates
    hp = x_ref.shape[1]

    # Prologue (off the serial path): ONE lane-dense matmul computes the
    # input projection for all timesteps, all three LSTMs and all four gates.
    gin_ref[...] = (
        jnp.dot(x_ref[...], wih_ref[...], preferred_element_type=jnp.float32)
        + b_ref[...])

    def sigmoid(v):
        # Exact identity; keeps the serial path on EUP tanh + VPU FMA
        # (no exact f32 divide per gate per step).
        return 0.5 * (1.0 + jnp.tanh(0.5 * v))

    h = jnp.zeros((batch, hp), jnp.float32)
    c = jnp.zeros((batch, hp), jnp.float32)

    # Static, fully-unrolled time loop (S is small & static).  Only the single
    # fused h @ W_hh matmul sits on the serial critical path per step.
    # TODO(synk): switch to lax.fori_loop(..., unroll=True) if S grows large.
    for t in range(seq_len):
        row = t * batch
        # One fused recurrent matmul per timestep.  W_hh is re-read from VMEM
        # each iteration on purpose: a (Hp, 4*Hp) f32 value held live across
        # the unrolled loop would pin the whole register file.
        gates = gin_ref[row:row + batch, :] + jnp.dot(
            h, whh_ref[...], preferred_element_type=jnp.float32)
        # Gate groups are 128-lane aligned -> whole-vreg lane slices.
        i_g = sigmoid(gates[:, 0 * hp:1 * hp])
        f_g = sigmoid(gates[:, 1 * hp:2 * hp])
        g_g = jnp.tanh(gates[:, 2 * hp:3 * hp])
        o_g = sigmoid(gates[:, 3 * hp:4 * hp])
        c = f_g * c + i_g * g_g
        h = o_g * jnp.tanh(c)
        out_ref[row:row + batch, :] = h.astype(out_ref.dtype)

    cn_ref[...] = c.astype(cn_ref.dtype)


# ----------------------------------------------------------------------------
# Wrapper: fuse params, call the kernel once, split the fused outputs.
# ----------------------------------------------------------------------------
def _fuse_encoder_params(params, hidden, hp):
    """Pack the 3 PyTorch-layout LSTMs into one block-diagonal, gate-fused
    weight set.  Gate g of LSTM l occupies columns [g*hp + l*H, g*hp + (l+1)*H)
    and rows [l*H, (l+1)*H); everything else is zero (so padding lanes stay
    exactly zero through the recurrence).  In production these would be
    pre-fused once instead of per forward call."""
    h = hidden
    wih = jnp.zeros((hp, 4 * hp), jnp.float32)
    whh = jnp.zeros((hp, 4 * hp), jnp.float32)
    bias = jnp.zeros((4 * hp,), jnp.float32)
    for l, name in enumerate(_LSTM_ORDER):
        p = params[name]
        b = p["b_ih"] + p["b_hh"]
        for g in range(4):
            r0, c0 = l * h, g * hp + l * h
            wih = wih.at[r0:r0 + h, c0:c0 + h].set(p["w_ih"][g * h:(g + 1) * h, :].T)
            whh = whh.at[r0:r0 + h, c0:c0 + h].set(p["w_hh"][g * h:(g + 1) * h, :].T)
            bias = bias.at[c0:c0 + h].set(b[g * h:(g + 1) * h])
    return wih, whh, bias.reshape(1, 4 * hp)


def recommender_v1_encoder_forward(params, user_inputs, product_inputs,
                                   neighbourhood_inputs):
    inputs = {"user": user_inputs, "product": product_inputs,
              "neighbourhood": neighbourhood_inputs}
    seq, batch, hidden = user_inputs.shape
    n_lstm = len(_LSTM_ORDER)
    hp = _round_up(n_lstm * hidden, 128)          # fused, 128-lane-padded width

    wih_f, whh_f, b_f = _fuse_encoder_params(params, hidden, hp)

    # Concatenate the three inputs along the hidden axis, zero-pad to the
    # fused lane width, and flatten (S, B) -> rows: the kernel sees a single
    # lane-dense 2D slab.
    x_cat = jnp.concatenate([inputs[n] for n in _LSTM_ORDER], axis=-1)
    x_cat = jnp.pad(x_cat, ((0, 0), (0, 0), (0, hp - n_lstm * hidden)))
    x2d = x_cat.reshape(seq * batch, hp).astype(jnp.float32)

    kernel = functools.partial(_fused_lstm_kernel, seq_len=seq, batch=batch)
    out2d, c_n = pl.pallas_call(
        kernel,
        out_shape=(
            jax.ShapeDtypeStruct((seq * batch, hp), jnp.float32),
            jax.ShapeDtypeStruct((batch, hp), jnp.float32),
        ),
        scratch_shapes=[pltpu.VMEM((seq * batch, 4 * hp), jnp.float32)],
    )(x2d, wih_f, whh_f, b_f)

    out3d = out2d.reshape(seq, batch, hp)
    per_lstm = {}
    for l, name in enumerate(_LSTM_ORDER):
        o = out3d[:, :, l * hidden:(l + 1) * hidden]        # (S, B, H)
        h_n = o[-1:]                                         # (1, B, H)
        c_l = c_n[:, l * hidden:(l + 1) * hidden][None]      # (1, B, H)
        per_lstm[name] = (o, (h_n, c_l))

    u_o, u_hc = per_lstm["user"]
    n_o, n_hc = per_lstm["neighbourhood"]
    p_o, p_hc = per_lstm["product"]
    # Matches PyTorch: (user_out, (h,c), nbh_out, (h,c), prod_out, (h,c))
    return (u_o, u_hc, n_o, n_hc, p_o, p_hc)


# ----------------------------------------------------------------------------
# Parameter init (PyTorch-style uniform(-1/sqrt(H), 1/sqrt(H)))
# ----------------------------------------------------------------------------
def init_lstm_params(key, hidden):
    bound = 1.0 / jnp.sqrt(jnp.float32(hidden))
    k = jax.random.split(key, 4)
    return dict(
        w_ih=jax.random.uniform(k[0], (4 * hidden, hidden), jnp.float32, -bound, bound),
        w_hh=jax.random.uniform(k[1], (4 * hidden, hidden), jnp.float32, -bound, bound),
        b_ih=jax.random.uniform(k[2], (4 * hidden,), jnp.float32, -bound, bound),
        b_hh=jax.random.uniform(k[3], (4 * hidden,), jnp.float32, -bound, bound),
    )


# ----------------------------------------------------------------------------
# Pure-JAX reference (for correctness check)
# ----------------------------------------------------------------------------
def ref_lstm(x, w_ih, w_hh, b_ih, b_hh):
    S, B, H = x.shape
    hi = jax.lax.Precision.HIGHEST

    def step(carry, x_t):
        h, c = carry
        gates = (jnp.dot(x_t, w_ih.T, precision=hi)
                 + jnp.dot(h, w_hh.T, precision=hi) + b_ih + b_hh)
        i = jax.nn.sigmoid(gates[:, 0 * H:1 * H])
        f = jax.nn.sigmoid(gates[:, 1 * H:2 * H])
        g = jnp.tanh(gates[:, 2 * H:3 * H])
        o = jax.nn.sigmoid(gates[:, 3 * H:4 * H])
        c_n = f * c + i * g
        h_n = o * jnp.tanh(c_n)
        return (h_n, c_n), h_n

    (h_f, c_f), out = jax.lax.scan(
        step, (jnp.zeros((B, H)), jnp.zeros((B, H))), x)
    return out, h_f[None], c_f[None]


if __name__ == "__main__":
    SEQ, BATCH, HIDDEN = 8, 2, 32

    root = jax.random.PRNGKey(0)
    k_user, k_prod, k_nbh, k_xu, k_xp, k_xn = jax.random.split(root, 6)

    params = {
        "user": init_lstm_params(k_user, HIDDEN),
        "product": init_lstm_params(k_prod, HIDDEN),
        "neighbourhood": init_lstm_params(k_nbh, HIDDEN),
    }

    user_inputs = jax.random.normal(k_xu, (SEQ, BATCH, HIDDEN), jnp.float32)
    product_inputs = jax.random.normal(k_xp, (SEQ, BATCH, HIDDEN), jnp.float32)
    neighbourhood_inputs = jax.random.normal(k_xn, (SEQ, BATCH, HIDDEN), jnp.float32)

    fwd = jax.jit(recommender_v1_encoder_forward)
    outs = fwd(params, user_inputs, product_inputs, neighbourhood_inputs)
    outs = jax.block_until_ready(outs)

    # Cross-check against a pure-JAX LSTM reference.
    ref_user = ref_lstm(user_inputs, **params["user"])
    ref_nbh = ref_lstm(neighbourhood_inputs, **params["neighbourhood"])
    ref_prod = ref_lstm(product_inputs, **params["product"])

    tol = dict(atol=1e-4, rtol=1e-4)
    np.testing.assert_allclose(outs[0], ref_user[0], **tol)
    np.testing.assert_allclose(outs[1][0], ref_user[1], **tol)
    np.testing.assert_allclose(outs[1][1], ref_user[2], **tol)
    np.testing.assert_allclose(outs[2], ref_nbh[0], **tol)
    np.testing.assert_allclose(outs[3][0], ref_nbh[1], **tol)
    np.testing.assert_allclose(outs[3][1], ref_nbh[2], **tol)
    np.testing.assert_allclose(outs[4], ref_prod[0], **tol)
    np.testing.assert_allclose(outs[5][0], ref_prod[1], **tol)
    np.testing.assert_allclose(outs[5][1], ref_prod[2], **tol)

    print("KERNEL_OK")
</pallas_src>

<mosaic_0001>
module attributes {stable_mosaic.version = 11 : i64} {
  func.func @_fused_lstm_kernel(%arg0: memref<16x128xf32, #tpu.memory_space<vmem>>, %arg1: memref<128x512xf32, #tpu.memory_space<vmem>>, %arg2: memref<128x512xf32, #tpu.memory_space<vmem>>, %arg3: memref<1x512xf32, #tpu.memory_space<vmem>>, %arg4: memref<16x128xf32, #tpu.memory_space<vmem>>, %arg5: memref<2x128xf32, #tpu.memory_space<vmem>>, %arg6: memref<16x512xf32, #tpu.memory_space<vmem>>) attributes {dimension_semantics = [], scalar_prefetch = 0 : i64, scratch_operands = 1 : i64, tpu.core_type = #tpu.core_type<tc>} {
    %c0 = arith.constant 0 : index
    %c0_0 = arith.constant 0 : index
    %0 = vector.load %arg0[%c0, %c0_0] : memref<16x128xf32, #tpu.memory_space<vmem>>, vector<16x128xf32>
    %c0_1 = arith.constant 0 : index
    %c0_2 = arith.constant 0 : index
    %1 = vector.load %arg1[%c0_1, %c0_2] : memref<128x512xf32, #tpu.memory_space<vmem>>, vector<128x512xf32>
    %cst = arith.constant dense<0.000000e+00> : vector<16x512xf32>
    %2 = tpu.matmul %0, %1, %cst {dimension_numbers = #tpu.dot_dimension_numbers<[1], [0], [0], [1], [0, 0, 1, 1], [], []>} : vector<16x128xf32>, vector<128x512xf32>, vector<16x512xf32> -> vector<16x512xf32>
    %c0_3 = arith.constant 0 : index
    %c0_4 = arith.constant 0 : index
    %3 = vector.load %arg3[%c0_3, %c0_4] : memref<1x512xf32, #tpu.memory_space<vmem>>, vector<1x512xf32>
    %4 = vector.broadcast %3 : vector<1x512xf32> to vector<16x512xf32>
    %5 = arith.addf %2, %4 : vector<16x512xf32>
    %c0_5 = arith.constant 0 : index
    %c0_6 = arith.constant 0 : index
    %6 = vector.load %arg6[%c0_5, %c0_6] : memref<16x512xf32, #tpu.memory_space<vmem>>, vector<16x512xf32>
    tpu.vector_store %arg6[%c0_5, %c0_6], %5 {strides = array<i32>} : memref<16x512xf32, #tpu.memory_space<vmem>>, vector<16x512xf32>,
    %cst_7 = arith.constant 0.000000e+00 : f32
    %7 = vector.broadcast %cst_7 : f32 to vector<2x128xf32>
    %cst_8 = arith.constant 0.000000e+00 : f32
    %8 = vector.broadcast %cst_8 : f32 to vector<2x128xf32>
    %c0_9 = arith.constant 0 : index
    %c0_10 = arith.constant 0 : index
    %9 = vector.load %arg6[%c0_9, %c0_10] : memref<16x512xf32, #tpu.memory_space<vmem>>, vector<2x512xf32>
    %c0_11 = arith.constant 0 : index
    %c0_12 = arith.constant 0 : index
    %10 = vector.load %arg2[%c0_11, %c0_12] : memref<128x512xf32, #tpu.memory_space<vmem>>, vector<128x512xf32>
    %cst_13 = arith.constant dense<0.000000e+00> : vector<2x512xf32>
    %11 = tpu.matmul %7, %10, %cst_13 {dimension_numbers = #tpu.dot_dimension_numbers<[1], [0], [0], [1], [0, 0, 1, 1], [], []>} : vector<2x128xf32>, vector<128x512xf32>, vector<2x512xf32> -> vector<2x512xf32>
    %12 = arith.addf %9, %11 : vector<2x512xf32>
    %13 = vector.extract_strided_slice %12 {offsets = [0, 0], sizes = [2, 128], strides = [1, 1]} : vector<2x512xf32> to vector<2x128xf32>
    %cst_14 = arith.constant 5.000000e-01 : f32
    %14 = vector.broadcast %cst_14 : f32 to vector<2x128xf32>
    %15 = arith.mulf %14, %13 : vector<2x128xf32>
    %16 = math.tanh %15 : vector<2x128xf32>
    %cst_15 = arith.constant 1.000000e+00 : f32
    %17 = vector.broadcast %cst_15 : f32 to vector<2x128xf32>
    %18 = arith.addf %17, %16 : vector<2x128xf32>
    %cst_16 = arith.constant 5.000000e-01 : f32
    %19 = vector.broadcast %cst_16 : f32 to vector<2x128xf32>
    %20 = arith.mulf %19, %18 : vector<2x128xf32>
    %21 = vector.extract_strided_slice %12 {offsets = [0, 128], sizes = [2, 128], strides = [1, 1]} : vector<2x512xf32> to vector<2x128xf32>
    %cst_17 = arith.constant 5.000000e-01 : f32
    %22 = vector.broadcast %cst_17 : f32 to vector<2x128xf32>
    %23 = arith.mulf %22, %21 : vector<2x128xf32>
    %24 = math.tanh %23 : vector<2x128xf32>
    %cst_18 = arith.constant 1.000000e+00 : f32
    %25 = vector.broadcast %cst_18 : f32 to vector<2x128xf32>
    %26 = arith.addf %25, %24 : vector<2x128xf32>
    %cst_19 = arith.constant 5.000000e-01 : f32
    %27 = vector.broadcast %cst_19 : f32 to vector<2x128xf32>
    %28 = arith.mulf %27, %26 : vector<2x128xf32>
    %29 = vector.extract_strided_slice %12 {offsets = [0, 256], sizes = [2, 128], strides = [1, 1]} : vector<2x512xf32> to vector<2x128xf32>
    %30 = math.tanh %29 : vector<2x128xf32>
    %31 = vector.extract_strided_slice %12 {offsets = [0, 384], sizes = [2, 128], strides = [1, 1]} : vector<2x512xf32> to vector<2x128xf32>
    %cst_20 = arith.constant 5.000000e-01 : f32
    %32 = vector.broadcast %cst_20 : f32 to vector<2x128xf32>
    %33 = arith.mulf %32, %31 : vector<2x128xf32>
    %34 = math.tanh %33 : vector<2x128xf32>
    %cst_21 = arith.constant 1.000000e+00 : f32
    %35 = vector.broadcast %cst_21 : f32 to vector<2x128xf32>
    %36 = arith.addf %35, %34 : vector<2x128xf32>
    %cst_22 = arith.constant 5.000000e-01 : f32
    %37 = vector.broadcast %cst_22 : f32 to vector<2x128xf32>
    %38 = arith.mulf %37, %36 : vector<2x128xf32>
    %39 = arith.mulf %28, %8 : vector<2x128xf32>
    %40 = arith.mulf %20, %30 : vector<2x128xf32>
    %41 = arith.addf %39, %40 : vector<2x128xf32>
    %42 = math.tanh %41 : vector<2x128xf32>
    %43 = arith.mulf %38, %42 : vector<2x128xf32>
    %c0_23 = arith.constant 0 : index
    %c0_24 = arith.constant 0 : index
    %44 = vector.load %arg4[%c0_23, %c0_24] : memref<16x128xf32, #tpu.memory_space<vmem>>, vector<2x128xf32>
    tpu.vector_store %arg4[%c0_23, %c0_24], %43 {strides = array<i32>} : memref<16x128xf32, #tpu.memory_space<vmem>>, vector<2x128xf32>,
    %c2 = arith.constant 2 : index
    %c0_25 = arith.constant 0 : index
    %45 = vector.load %arg6[%c2, %c0_25] : memref<16x512xf32, #tpu.memory_space<vmem>>, vector<2x512xf32>
    %c0_26 = arith.constant 0 : index
    %c0_27 = arith.constant 0 : index
    %46 = vector.load %arg2[%c0_26, %c0_27] : memref<128x512xf32, #tpu.memory_space<vmem>>, vector<128x512xf32>
    %cst_28 = arith.constant dense<0.000000e+00> : vector<2x512xf32>
    %47 = tpu.matmul %43, %46, %cst_28 {dimension_numbers = #tpu.dot_dimension_numbers<[1], [0], [0], [1], [0, 0, 1, 1], [], []>} : vector<2x128xf32>, vector<128x512xf32>, vector<2x512xf32> -> vector<2x512xf32>
    %48 = arith.addf %45, %47 : vector<2x512xf32>
    %49 = vector.extract_strided_slice %48 {offsets = [0, 0], sizes = [2, 128], strides = [1, 1]} : vector<2x512xf32> to vector<2x128xf32>
    %cst_29 = arith.constant 5.000000e-01 : f32
    %50 = vector.broadcast %cst_29 : f32 to vector<2x128xf32>
    %51 = arith.mulf %50, %49 : vector<2x128xf32>
    %52 = math.tanh %51 : vector<2x128xf32>
    %cst_30 = arith.constant 1.000000e+00 : f32
    %53 = vector.broadcast %cst_30 : f32 to vector<2x128xf32>
    %54 = arith.addf %53, %52 : vector<2x128xf32>
    %cst_31 = arith.constant 5.000000e-01 : f32
    %55 = vector.broadcast %cst_31 : f32 to vector<2x128xf32>
    %56 = arith.mulf %55, %54 : vector<2x128xf32>
    %57 = vector.extract_strided_slice %48 {offsets = [0, 128], sizes = [2, 128], strides = [1, 1]} : vector<2x512xf32> to vector<2x128xf32>
    %cst_32 = arith.constant 5.000000e-01 : f32
    %58 = vector.broadcast %cst_32 : f32 to vector<2x128xf32>
    %59 = arith.mulf %58, %57 : vector<2x128xf32>
    %60 = math.tanh %59 : vector<2x128xf32>
    %cst_33 = arith.constant 1.000000e+00 : f32
    %61 = vector.broadcast %cst_33 : f32 to vector<2x128xf32>
    %62 = arith.addf %61, %60 : vector<2x128xf32>
    %cst_34 = arith.constant 5.000000e-01 : f32
    %63 = vector.broadcast %cst_34 : f32 to vector<2x128xf32>
    %64 = arith.mulf %63, %62 : vector<2x128xf32>
    %65 = vector.extract_strided_slice %48 {offsets = [0, 256], sizes = [2, 128], strides = [1, 1]} : vector<2x512xf32> to vector<2x128xf32>
    %66 = math.tanh %65 : vector<2x128xf32>
    %67 = vector.extract_strided_slice %48 {offsets = [0, 384], sizes = [2, 128], strides = [1, 1]} : vector<2x512xf32> to vector<2x128xf32>
    %cst_35 = arith.constant 5.000000e-01 : f32
    %68 = vector.broadcast %cst_35 : f32 to vector<2x128xf32>
    %69 = arith.mulf %68, %67 : vector<2x128xf32>
    %70 = math.tanh %69 : vector<2x128xf32>
    %cst_36 = arith.constant 1.000000e+00 : f32
    %71 = vector.broadcast %cst_36 : f32 to vector<2x128xf32>
    %72 = arith.addf %71, %70 : vector<2x128xf32>
    %cst_37 = arith.constant 5.000000e-01 : f32
    %73 = vector.broadcast %cst_37 : f32 to vector<2x128xf32>
    %74 = arith.mulf %73, %72 : vector<2x128xf32>
    %75 = arith.mulf %64, %41 : vector<2x128xf32>
    %76 = arith.mulf %56, %66 : vector<2x128xf32>
    %77 = arith.addf %75, %76 : vector<2x128xf32>
    %78 = math.tanh %77 : vector<2x128xf32>
    %79 = arith.mulf %74, %78 : vector<2x128xf32>
    %c2_38 = arith.constant 2 : index
    %c0_39 = arith.constant 0 : index
    %80 = vector.load %arg4[%c2_38, %c0_39] : memref<16x128xf32, #tpu.memory_space<vmem>>, vector<2x128xf32>
    tpu.vector_store %arg4[%c2_38, %c0_39], %79 {strides = array<i32>} : memref<16x128xf32, #tpu.memory_space<vmem>>, vector<2x128xf32>,
    %c4 = arith.constant 4 : index
    %c0_40 = arith.constant 0 : index
    %81 = vector.load %arg6[%c4, %c0_40] : memref<16x512xf32, #tpu.memory_space<vmem>>, vector<2x512xf32>
    %c0_41 = arith.constant 0 : index
    %c0_42 = arith.constant 0 : index
    %82 = vector.load %arg2[%c0_41, %c0_42] : memref<128x512xf32, #tpu.memory_space<vmem>>, vector<128x512xf32>
    %cst_43 = arith.constant dense<0.000000e+00> : vector<2x512xf32>
    %83 = tpu.matmul %79, %82, %cst_43 {dimension_numbers = #tpu.dot_dimension_numbers<[1], [0], [0], [1], [0, 0, 1, 1], [], []>} : vector<2x128xf32>, vector<128x512xf32>, vector<2x512xf32> -> vector<2x512xf32>
    %84 = arith.addf %81, %83 : vector<2x512xf32>
    %85 = vector.extract_strided_slice %84 {offsets = [0, 0], sizes = [2, 128], strides = [1, 1]} : vector<2x512xf32> to vector<2x128xf32>
    %cst_44 = arith.constant 5.000000e-01 : f32
    %86 = vector.broadcast %cst_44 : f32 to vector<2x128xf32>
    %87 = arith.mulf %86, %85 : vector<2x128xf32>
    %88 = math.tanh %87 : vector<2x128xf32>
    %cst_45 = arith.constant 1.000000e+00 : f32
    %89 = vector.broadcast %cst_45 : f32 to vector<2x128xf32>
    %90 = arith.addf %89, %88 : vector<2x128xf32>
    %cst_46 = arith.constant 5.000000e-01 : f32
    %91 = vector.broadcast %cst_46 : f32 to vector<2x128xf32>
    %92 = arith.mulf %91, %90 : vector<2x128xf32>
    %93 = vector.extract_strided_slice %84 {offsets = [0, 128], sizes = [2, 128], strides = [1, 1]} : vector<2x512xf32> to vector<2x128xf32>
    %cst_47 = arith.constant 5.000000e-01 : f32
    %94 = vector.broadcast %cst_47 : f32 to vector<2x128xf32>
    %95 = arith.mulf %94, %93 : vector<2x128xf32>
    %96 = math.tanh %95 : vector<2x128xf32>
    %cst_48 = arith.constant 1.000000e+00 : f32
    %97 = vector.broadcast %cst_48 : f32 to vector<2x128xf32>
    %98 = arith.addf %97, %96 : vector<2x128xf32>
    %cst_49 = arith.constant 5.000000e-01 : f32
    %99 = vector.broadcast %cst_49 : f32 to vector<2x128xf32>
    %100 = arith.mulf %99, %98 : vector<2x128xf32>
    %101 = vector.extract_strided_slice %84 {offsets = [0, 256], sizes = [2, 128], strides = [1, 1]} : vector<2x512xf32> to vector<2x128xf32>
    %102 = math.tanh %101 : vector<2x128xf32>
    %103 = vector.extract_strided_slice %84 {offsets = [0, 384], sizes = [2, 128], strides = [1, 1]} : vector<2x512xf32> to vector<2x128xf32>
    %cst_50 = arith.constant 5.000000e-01 : f32
    %104 = vector.broadcast %cst_50 : f32 to vector<2x128xf32>
    %105 = arith.mulf %104, %103 : vector<2x128xf32>
    %106 = math.tanh %105 : vector<2x128xf32>
    %cst_51 = arith.constant 1.000000e+00 : f32
    %107 = vector.broadcast %cst_51 : f32 to vector<2x128xf32>
    %108 = arith.addf %107, %106 : vector<2x128xf32>
    %cst_52 = arith.constant 5.000000e-01 : f32
    %109 = vector.broadcast %cst_52 : f32 to vector<2x128xf32>
    %110 = arith.mulf %109, %108 : vector<2x128xf32>
    %111 = arith.mulf %100, %77 : vector<2x128xf32>
    %112 = arith.mulf %92, %102 : vector<2x128xf32>
    %113 = arith.addf %111, %112 : vector<2x128xf32>
    %114 = math.tanh %113 : vector<2x128xf32>
    %115 = arith.mulf %110, %114 : vector<2x128xf32>
    %c4_53 = arith.constant 4 : index
    %c0_54 = arith.constant 0 : index
    %116 = vector.load %arg4[%c4_53, %c0_54] : memref<16x128xf32, #tpu.memory_space<vmem>>, vector<2x128xf32>
    tpu.vector_store %arg4[%c4_53, %c0_54], %115 {strides = array<i32>} : memref<16x128xf32, #tpu.memory_space<vmem>>, vector<2x128xf32>,
    %c6 = arith.constant 6 : index
    %c0_55 = arith.constant 0 : index
    %117 = vector.load %arg6[%c6, %c0_55] : memref<16x512xf32, #tpu.memory_space<vmem>>, vector<2x512xf32>
    %c0_56 = arith.constant 0 : index
    %c0_57 = arith.constant 0 : index
    %118 = vector.load %arg2[%c0_56, %c0_57] : memref<128x512xf32, #tpu.memory_space<vmem>>, vector<128x512xf32>
    %cst_58 = arith.constant dense<0.000000e+00> : vector<2x512xf32>
    %119 = tpu.matmul %115, %118, %cst_58 {dimension_numbers = #tpu.dot_dimension_numbers<[1], [0], [0], [1], [0, 0, 1, 1], [], []>} : vector<2x128xf32>, vector<128x512xf32>, vector<2x512xf32> -> vector<2x512xf32>
    %120 = arith.addf %117, %119 : vector<2x512xf32>
    %121 = vector.extract_strided_slice %120 {offsets = [0, 0], sizes = [2, 128], strides = [1, 1]} : vector<2x512xf32> to vector<2x128xf32>
    %cst_59 = arith.constant 5.000000e-01 : f32
    %122 = vector.broadcast %cst_59 : f32 to vector<2x128xf32>
    %123 = arith.mulf %122, %121 : vector<2x128xf32>
    %124 = math.tanh %123 : vector<2x128xf32>
    %cst_60 = arith.constant 1.000000e+00 : f32
    %125 = vector.broadcast %cst_60 : f32 to vector<2x128xf32>
    %126 = arith.addf %125, %124 : vector<2x128xf32>
    %cst_61 = arith.constant 5.000000e-01 : f32
    %127 = vector.broadcast %cst_61 : f32 to vector<2x128xf32>
    %128 = arith.mulf %127, %126 : vector<2x128xf32>
    %129 = vector.extract_strided_slice %120 {offsets = [0, 128], sizes = [2, 128], strides = [1, 1]} : vector<2x512xf32> to vector<2x128xf32>
    %cst_62 = arith.constant 5.000000e-01 : f32
    %130 = vector.broadcast %cst_62 : f32 to vector<2x128xf32>
    %131 = arith.mulf %130, %129 : vector<2x128xf32>
    %132 = math.tanh %131 : vector<2x128xf32>
    %cst_63 = arith.constant 1.000000e+00 : f32
    %133 = vector.broadcast %cst_63 : f32 to vector<2x128xf32>
    %134 = arith.addf %133, %132 : vector<2x128xf32>
    %cst_64 = arith.constant 5.000000e-01 : f32
    %135 = vector.broadcast %cst_64 : f32 to vector<2x128xf32>
    %136 = arith.mulf %135, %134 : vector<2x128xf32>
    %137 = vector.extract_strided_slice %120 {offsets = [0, 256], sizes = [2, 128], strides = [1, 1]} : vector<2x512xf32> to vector<2x128xf32>
    %138 = math.tanh %137 : vector<2x128xf32>
    %139 = vector.extract_strided_slice %120 {offsets = [0, 384], sizes = [2, 128], strides = [1, 1]} : vector<2x512xf32> to vector<2x128xf32>
    %cst_65 = arith.constant 5.000000e-01 : f32
    %140 = vector.broadcast %cst_65 : f32 to vector<2x128xf32>
    %141 = arith.mulf %140, %139 : vector<2x128xf32>
    %142 = math.tanh %141 : vector<2x128xf32>
    %cst_66 = arith.constant 1.000000e+00 : f32
    %143 = vector.broadcast %cst_66 : f32 to vector<2x128xf32>
    %144 = arith.addf %143, %142 : vector<2x128xf32>
    %cst_67 = arith.constant 5.000000e-01 : f32
    %145 = vector.broadcast %cst_67 : f32 to vector<2x128xf32>
    %146 = arith.mulf %145, %144 : vector<2x128xf32>
    %147 = arith.mulf %136, %113 : vector<2x128xf32>
    %148 = arith.mulf %128, %138 : vector<2x128xf32>
    %149 = arith.addf %147, %148 : vector<2x128xf32>
    %150 = math.tanh %149 : vector<2x128xf32>
    %151 = arith.mulf %146, %150 : vector<2x128xf32>
    %c6_68 = arith.constant 6 : index
    %c0_69 = arith.constant 0 : index
    %152 = vector.load %arg4[%c6_68, %c0_69] : memref<16x128xf32, #tpu.memory_space<vmem>>, vector<2x128xf32>
    tpu.vector_store %arg4[%c6_68, %c0_69], %151 {strides = array<i32>} : memref<16x128xf32, #tpu.memory_space<vmem>>, vector<2x128xf32>,
    %c8 = arith.constant 8 : index
    %c0_70 = arith.constant 0 : index
    %153 = vector.load %arg6[%c8, %c0_70] : memref<16x512xf32, #tpu.memory_space<vmem>>, vector<2x512xf32>
    %c0_71 = arith.constant 0 : index
    %c0_72 = arith.constant 0 : index
    %154 = vector.load %arg2[%c0_71, %c0_72] : memref<128x512xf32, #tpu.memory_space<vmem>>, vector<128x512xf32>
    %cst_73 = arith.constant dense<0.000000e+00> : vector<2x512xf32>
    %155 = tpu.matmul %151, %154, %cst_73 {dimension_numbers = #tpu.dot_dimension_numbers<[1], [0], [0], [1], [0, 0, 1, 1], [], []>} : vector<2x128xf32>, vector<128x512xf32>, vector<2x512xf32> -> vector<2x512xf32>
    %156 = arith.addf %153, %155 : vector<2x512xf32>
    %157 = vector.extract_strided_slice %156 {offsets = [0, 0], sizes = [2, 128], strides = [1, 1]} : vector<2x512xf32> to vector<2x128xf32>
    %cst_74 = arith.constant 5.000000e-01 : f32
    %158 = vector.broadcast %cst_74 : f32 to vector<2x128xf32>
    %159 = arith.mulf %158, %157 : vector<2x128xf32>
    %160 = math.tanh %159 : vector<2x128xf32>
    %cst_75 = arith.constant 1.000000e+00 : f32
    %161 = vector.broadcast %cst_75 : f32 to vector<2x128xf32>
    %162 = arith.addf %161, %160 : vector<2x128xf32>
    %cst_76 = arith.constant 5.000000e-01 : f32
    %163 = vector.broadcast %cst_76 : f32 to vector<2x128xf32>
    %164 = arith.mulf %163, %162 : vector<2x128xf32>
    %165 = vector.extract_strided_slice %156 {offsets = [0, 128], sizes = [2, 128], strides = [1, 1]} : vector<2x512xf32> to vector<2x128xf32>
    %cst_77 = arith.constant 5.000000e-01 : f32
    %166 = vector.broadcast %cst_77 : f32 to vector<2x128xf32>
    %167 = arith.mulf %166, %165 : vector<2x128xf32>
    %168 = math.tanh %167 : vector<2x128xf32>
    %cst_78 = arith.constant 1.000000e+00 : f32
    %169 = vector.broadcast %cst_78 : f32 to vector<2x128xf32>
    %170 = arith.addf %169, %168 : vector<2x128xf32>
    %cst_79 = arith.constant 5.000000e-01 : f32
    %171 = vector.broadcast %cst_79 : f32 to vector<2x128xf32>
    %172 = arith.mulf %171, %170 : vector<2x128xf32>
    %173 = vector.extract_strided_slice %156 {offsets = [0, 256], sizes = [2, 128], strides = [1, 1]} : vector<2x512xf32> to vector<2x128xf32>
    %174 = math.tanh %173 : vector<2x128xf32>
    %175 = vector.extract_strided_slice %156 {offsets = [0, 384], sizes = [2, 128], strides = [1, 1]} : vector<2x512xf32> to vector<2x128xf32>
    %cst_80 = arith.constant 5.000000e-01 : f32
    %176 = vector.broadcast %cst_80 : f32 to vector<2x128xf32>
    %177 = arith.mulf %176, %175 : vector<2x128xf32>
    %178 = math.tanh %177 : vector<2x128xf32>
    %cst_81 = arith.constant 1.000000e+00 : f32
    %179 = vector.broadcast %cst_81 : f32 to vector<2x128xf32>
    %180 = arith.addf %179, %178 : vector<2x128xf32>
    %cst_82 = arith.constant 5.000000e-01 : f32
    %181 = vector.broadcast %cst_82 : f32 to vector<2x128xf32>
    %182 = arith.mulf %181, %180 : vector<2x128xf32>
    %183 = arith.mulf %172, %149 : vector<2x128xf32>
    %184 = arith.mulf %164, %174 : vector<2x128xf32>
    %185 = arith.addf %183, %184 : vector<2x128xf32>
    %186 = math.tanh %185 : vector<2x128xf32>
    %187 = arith.mulf %182, %186 : vector<2x128xf32>
    %c8_83 = arith.constant 8 : index
    %c0_84 = arith.constant 0 : index
    %188 = vector.load %arg4[%c8_83, %c0_84] : memref<16x128xf32, #tpu.memory_space<vmem>>, vector<2x128xf32>
    tpu.vector_store %arg4[%c8_83, %c0_84], %187 {strides = array<i32>} : memref<16x128xf32, #tpu.memory_space<vmem>>, vector<2x128xf32>,
    %c10 = arith.constant 10 : index
    %c0_85 = arith.constant 0 : index
    %189 = vector.load %arg6[%c10, %c0_85] : memref<16x512xf32, #tpu.memory_space<vmem>>, vector<2x512xf32>
    %c0_86 = arith.constant 0 : index
    %c0_87 = arith.constant 0 : index
    %190 = vector.load %arg2[%c0_86, %c0_87] : memref<128x512xf32, #tpu.memory_space<vmem>>, vector<128x512xf32>
    %cst_88 = arith.constant dense<0.000000e+00> : vector<2x512xf32>
    %191 = tpu.matmul %187, %190, %cst_88 {dimension_numbers = #tpu.dot_dimension_numbers<[1], [0], [0], [1], [0, 0, 1, 1], [], []>} : vector<2x128xf32>, vector<128x512xf32>, vector<2x512xf32> -> vector<2x512xf32>
    %192 = arith.addf %189, %191 : vector<2x512xf32>
    %193 = vector.extract_strided_slice %192 {offsets = [0, 0], sizes = [2, 128], strides = [1, 1]} : vector<2x512xf32> to vector<2x128xf32>
    %cst_89 = arith.constant 5.000000e-01 : f32
    %194 = vector.broadcast %cst_89 : f32 to vector<2x128xf32>
    %195 = arith.mulf %194, %193 : vector<2x128xf32>
    %196 = math.tanh %195 : vector<2x128xf32>
    %cst_90 = arith.constant 1.000000e+00 : f32
    %197 = vector.broadcast %cst_90 : f32 to vector<2x128xf32>
    %198 = arith.addf %197, %196 : vector<2x128xf32>
    %cst_91 = arith.constant 5.000000e-01 : f32
    %199 = vector.broadcast %cst_91 : f32 to vector<2x128xf32>
    %200 = arith.mulf %199, %198 : vector<2x128xf32>
    %201 = vector.extract_strided_slice %192 {offsets = [0, 128], sizes = [2, 128], strides = [1, 1]} : vector<2x512xf32> to vector<2x128xf32>
    %cst_92 = arith.constant 5.000000e-01 : f32
    %202 = vector.broadcast %cst_92 : f32 to vector<2x128xf32>
    %203 = arith.mulf %202, %201 : vector<2x128xf32>
    %204 = math.tanh %203 : vector<2x128xf32>
    %cst_93 = arith.constant 1.000000e+00 : f32
    %205 = vector.broadcast %cst_93 : f32 to vector<2x128xf32>
    %206 = arith.addf %205, %204 : vector<2x128xf32>
    %cst_94 = arith.constant 5.000000e-01 : f32
    %207 = vector.broadcast %cst_94 : f32 to vector<2x128xf32>
    %208 = arith.mulf %207, %206 : vector<2x128xf32>
    %209 = vector.extract_strided_slice %192 {offsets = [0, 256], sizes = [2, 128], strides = [1, 1]} : vector<2x512xf32> to vector<2x128xf32>
    %210 = math.tanh %209 : vector<2x128xf32>
    %211 = vector.extract_strided_slice %192 {offsets = [0, 384], sizes = [2, 128], strides = [1, 1]} : vector<2x512xf32> to vector<2x128xf32>
    %cst_95 = arith.constant 5.000000e-01 : f32
    %212 = vector.broadcast %cst_95 : f32 to vector<2x128xf32>
    %213 = arith.mulf %212, %211 : vector<2x128xf32>
    %214 = math.tanh %213 : vector<2x128xf32>
    %cst_96 = arith.constant 1.000000e+00 : f32
    %215 = vector.broadcast %cst_96 : f32 to vector<2x128xf32>
    %216 = arith.addf %215, %214 : vector<2x128xf32>
    %cst_97 = arith.constant 5.000000e-01 : f32
    %217 = vector.broadcast %cst_97 : f32 to vector<2x128xf32>
    %218 = arith.mulf %217, %216 : vector<2x128xf32>
    %219 = arith.mulf %208, %185 : vector<2x128xf32>
    %220 = arith.mulf %200, %210 : vector<2x128xf32>
    %221 = arith.addf %219, %220 : vector<2x128xf32>
    %222 = math.tanh %221 : vector<2x128xf32>
    %223 = arith.mulf %218, %222 : vector<2x128xf32>
    %c10_98 = arith.constant 10 : index
    %c0_99 = arith.constant 0 : index
    %224 = vector.load %arg4[%c10_98, %c0_99] : memref<16x128xf32, #tpu.memory_space<vmem>>, vector<2x128xf32>
    tpu.vector_store %arg4[%c10_98, %c0_99], %223 {strides = array<i32>} : memref<16x128xf32, #tpu.memory_space<vmem>>, vector<2x128xf32>,
    %c12 = arith.constant 12 : index
    %c0_100 = arith.constant 0 : index
    %225 = vector.load %arg6[%c12, %c0_100] : memref<16x512xf32, #tpu.memory_space<vmem>>, vector<2x512xf32>
    %c0_101 = arith.constant 0 : index
    %c0_102 = arith.constant 0 : index
    %226 = vector.load %arg2[%c0_101, %c0_102] : memref<128x512xf32, #tpu.memory_space<vmem>>, vector<128x512xf32>
    %cst_103 = arith.constant dense<0.000000e+00> : vector<2x512xf32>
    %227 = tpu.matmul %223, %226, %cst_103 {dimension_numbers = #tpu.dot_dimension_numbers<[1], [0], [0], [1], [0, 0, 1, 1], [], []>} : vector<2x128xf32>, vector<128x512xf32>, vector<2x512xf32> -> vector<2x512xf32>
    %228 = arith.addf %225, %227 : vector<2x512xf32>
    %229 = vector.extract_strided_slice %228 {offsets = [0, 0], sizes = [2, 128], strides = [1, 1]} : vector<2x512xf32> to vector<2x128xf32>
    %cst_104 = arith.constant 5.000000e-01 : f32
    %230 = vector.broadcast %cst_104 : f32 to vector<2x128xf32>
    %231 = arith.mulf %230, %229 : vector<2x128xf32>
    %232 = math.tanh %231 : vector<2x128xf32>
    %cst_105 = arith.constant 1.000000e+00 : f32
    %233 = vector.broadcast %cst_105 : f32 to vector<2x128xf32>
    %234 = arith.addf %233, %232 : vector<2x128xf32>
    %cst_106 = arith.constant 5.000000e-01 : f32
    %235 = vector.broadcast %cst_106 : f32 to vector<2x128xf32>
    %236 = arith.mulf %235, %234 : vector<2x128xf32>
    %237 = vector.extract_strided_slice %228 {offsets = [0, 128], sizes = [2, 128], strides = [1, 1]} : vector<2x512xf32> to vector<2x128xf32>
    %cst_107 = arith.constant 5.000000e-01 : f32
    %238 = vector.broadcast %cst_107 : f32 to vector<2x128xf32>
    %239 = arith.mulf %238, %237 : vector<2x128xf32>
    %240 = math.tanh %239 : vector<2x128xf32>
    %cst_108 = arith.constant 1.000000e+00 : f32
    %241 = vector.broadcast %cst_108 : f32 to vector<2x128xf32>
    %242 = arith.addf %241, %240 : vector<2x128xf32>
    %cst_109 = arith.constant 5.000000e-01 : f32
    %243 = vector.broadcast %cst_109 : f32 to vector<2x128xf32>
    %244 = arith.mulf %243, %242 : vector<2x128xf32>
    %245 = vector.extract_strided_slice %228 {offsets = [0, 256], sizes = [2, 128], strides = [1, 1]} : vector<2x512xf32> to vector<2x128xf32>
    %246 = math.tanh %245 : vector<2x128xf32>
    %247 = vector.extract_strided_slice %228 {offsets = [0, 384], sizes = [2, 128], strides = [1, 1]} : vector<2x512xf32> to vector<2x128xf32>
    %cst_110 = arith.constant 5.000000e-01 : f32
    %248 = vector.broadcast %cst_110 : f32 to vector<2x128xf32>
    %249 = arith.mulf %248, %247 : vector<2x128xf32>
    %250 = math.tanh %249 : vector<2x128xf32>
    %cst_111 = arith.constant 1.000000e+00 : f32
    %251 = vector.broadcast %cst_111 : f32 to vector<2x128xf32>
    %252 = arith.addf %251, %250 : vector<2x128xf32>
    %cst_112 = arith.constant 5.000000e-01 : f32
    %253 = vector.broadcast %cst_112 : f32 to vector<2x128xf32>
    %254 = arith.mulf %253, %252 : vector<2x128xf32>
    %255 = arith.mulf %244, %221 : vector<2x128xf32>
    %256 = arith.mulf %236, %246 : vector<2x128xf32>
    %257 = arith.addf %255, %256 : vector<2x128xf32>
    %258 = math.tanh %257 : vector<2x128xf32>
    %259 = arith.mulf %254, %258 : vector<2x128xf32>
    %c12_113 = arith.constant 12 : index
    %c0_114 = arith.constant 0 : index
    %260 = vector.load %arg4[%c12_113, %c0_114] : memref<16x128xf32, #tpu.memory_space<vmem>>, vector<2x128xf32>
    tpu.vector_store %arg4[%c12_113, %c0_114], %259 {strides = array<i32>} : memref<16x128xf32, #tpu.memory_space<vmem>>, vector<2x128xf32>,
    %c14 = arith.constant 14 : index
    %c0_115 = arith.constant 0 : index
    %261 = vector.load %arg6[%c14, %c0_115] : memref<16x512xf32, #tpu.memory_space<vmem>>, vector<2x512xf32>
    %c0_116 = arith.constant 0 : index
    %c0_117 = arith.constant 0 : index
    %262 = vector.load %arg2[%c0_116, %c0_117] : memref<128x512xf32, #tpu.memory_space<vmem>>, vector<128x512xf32>
    %cst_118 = arith.constant dense<0.000000e+00> : vector<2x512xf32>
    %263 = tpu.matmul %259, %262, %cst_118 {dimension_numbers = #tpu.dot_dimension_numbers<[1], [0], [0], [1], [0, 0, 1, 1], [], []>} : vector<2x128xf32>, vector<128x512xf32>, vector<2x512xf32> -> vector<2x512xf32>
    %264 = arith.addf %261, %263 : vector<2x512xf32>
    %265 = vector.extract_strided_slice %264 {offsets = [0, 0], sizes = [2, 128], strides = [1, 1]} : vector<2x512xf32> to vector<2x128xf32>
    %cst_119 = arith.constant 5.000000e-01 : f32
    %266 = vector.broadcast %cst_119 : f32 to vector<2x128xf32>
    %267 = arith.mulf %266, %265 : vector<2x128xf32>
    %268 = math.tanh %267 : vector<2x128xf32>
    %cst_120 = arith.constant 1.000000e+00 : f32
    %269 = vector.broadcast %cst_120 : f32 to vector<2x128xf32>
    %270 = arith.addf %269, %268 : vector<2x128xf32>
    %cst_121 = arith.constant 5.000000e-01 : f32
    %271 = vector.broadcast %cst_121 : f32 to vector<2x128xf32>
    %272 = arith.mulf %271, %270 : vector<2x128xf32>
    %273 = vector.extract_strided_slice %264 {offsets = [0, 128], sizes = [2, 128], strides = [1, 1]} : vector<2x512xf32> to vector<2x128xf32>
    %cst_122 = arith.constant 5.000000e-01 : f32
    %274 = vector.broadcast %cst_122 : f32 to vector<2x128xf32>
    %275 = arith.mulf %274, %273 : vector<2x128xf32>
    %276 = math.tanh %275 : vector<2x128xf32>
    %cst_123 = arith.constant 1.000000e+00 : f32
    %277 = vector.broadcast %cst_123 : f32 to vector<2x128xf32>
    %278 = arith.addf %277, %276 : vector<2x128xf32>
    %cst_124 = arith.constant 5.000000e-01 : f32
    %279 = vector.broadcast %cst_124 : f32 to vector<2x128xf32>
    %280 = arith.mulf %279, %278 : vector<2x128xf32>
    %281 = vector.extract_strided_slice %264 {offsets = [0, 256], sizes = [2, 128], strides = [1, 1]} : vector<2x512xf32> to vector<2x128xf32>
    %282 = math.tanh %281 : vector<2x128xf32>
    %283 = vector.extract_strided_slice %264 {offsets = [0, 384], sizes = [2, 128], strides = [1, 1]} : vector<2x512xf32> to vector<2x128xf32>
    %cst_125 = arith.constant 5.000000e-01 : f32
    %284 = vector.broadcast %cst_125 : f32 to vector<2x128xf32>
    %285 = arith.mulf %284, %283 : vector<2x128xf32>
    %286 = math.tanh %285 : vector<2x128xf32>
    %cst_126 = arith.constant 1.000000e+00 : f32
    %287 = vector.broadcast %cst_126 : f32 to vector<2x128xf32>
    %288 = arith.addf %287, %286 : vector<2x128xf32>
    %cst_127 = arith.constant 5.000000e-01 : f32
    %289 = vector.broadcast %cst_127 : f32 to vector<2x128xf32>
    %290 = arith.mulf %289, %288 : vector<2x128xf32>
    %291 = arith.mulf %280, %257 : vector<2x128xf32>
    %292 = arith.mulf %272, %282 : vector<2x128xf32>
    %293 = arith.addf %291, %292 : vector<2x128xf32>
    %294 = math.tanh %293 : vector<2x128xf32>
    %295 = arith.mulf %290, %294 : vector<2x128xf32>
    %c14_128 = arith.constant 14 : index
    %c0_129 = arith.constant 0 : index
    %296 = vector.load %arg4[%c14_128, %c0_129] : memref<16x128xf32, #tpu.memory_space<vmem>>, vector<2x128xf32>
    tpu.vector_store %arg4[%c14_128, %c0_129], %295 {strides = array<i32>} : memref<16x128xf32, #tpu.memory_space<vmem>>, vector<2x128xf32>,
    %c0_130 = arith.constant 0 : index
    %c0_131 = arith.constant 0 : index
    %297 = vector.load %arg5[%c0_130, %c0_131] : memref<2x128xf32, #tpu.memory_space<vmem>>, vector<2x128xf32>
    tpu.vector_store %arg5[%c0_130, %c0_131], %293 {strides = array<i32>} : memref<2x128xf32, #tpu.memory_space<vmem>>, vector<2x128xf32>,
    return
  }
}

</mosaic_0001>

<bundles_post_ra>
// kernel: recommender_v1_encoder_forward.1
= control target key start
LH: loop header
LB: loop body
LE: loop exit
PB: predicated region body
PF: predicated region fallthrough
CT: control target
= control target key end

     0   :  { %s3316_s1 = inlined_call_operand.vmem [shape: f32[128,512], index: 1, kind: input, shape index: {}]   ;;  %s3317_s2 = inlined_call_operand.vmem [shape: f32[128,512], index: 2, kind: input, shape index: {}]   ;;  %s3318_s0 = inlined_call_operand.vmem [shape: f32[16,128], index: 0, kind: input, shape index: {}]   ;;  %s3319_s3 = inlined_call_operand.vmem [shape: f32[1,512], index: 3, kind: input, shape index: {}]   ;;  %s3320_s4 = inlined_call_operand.vmem [shape: f32[16,128], index: 4, kind: output, shape index: {0}]   ;;  %s3321_s5 = inlined_call_operand.vmem [shape: f32[2,128], index: 5, kind: output, shape index: {1}]  }
   0x1   :  { %v81_v0 = vld [vmem:[%s3316_s1 + $0x1e0] sm:$0xff]  ;;  %v82_v1 = vld [vmem:[%s3316_s1 + $0x1e8] sm:$0xff]  ;;  %v83_v2 = vld [vmem:[%s3316_s1 + $0x1f0] sm:$0xff] }
   0x2   :  { %95 = vmatpush.msra.mxu0 %v81_v0  ;;  %118 = vmatpush.msra.mxu1 %v82_v1  ;;  %v84_v3 = vld [vmem:[%s3316_s1 + $0x1f8] sm:$0xff]  ;;  %v77_v4 = vld [vmem:[%s3316_s1 + $0x1c0] sm:$0xff]  ;;  %v78_v5 = vld [vmem:[%s3316_s1 + $0x1c8] sm:$0xff] }
   0x3   :  { %141 = vmatpush.msra.mxu2 %v83_v2  ;;  %164 = vmatpush.msra.mxu3 %v84_v3  ;;  %v79_v6 = vld [vmem:[%s3316_s1 + $0x1d0] sm:$0xff]  ;;  %v80_v7 = vld [vmem:[%s3316_s1 + $0x1d8] sm:$0xff]  ;;  %v73_v8 = vld [vmem:[%s3316_s1 + $0x1a0] sm:$0xff] }
   0x4   :  { %96 = vmatpush.msra.mxu0 %v77_v4  ;;  %119 = vmatpush.msra.mxu1 %v78_v5  ;;  %v74_v9 = vld [vmem:[%s3316_s1 + $0x1a8] sm:$0xff]  ;;  %v75_v10 = vld [vmem:[%s3316_s1 + $0x1b0] sm:$0xff]  ;;  %v76_v11 = vld [vmem:[%s3316_s1 + $0x1b8] sm:$0xff] }
   0x5   :  { %142 = vmatpush.msra.mxu2 %v79_v6  ;;  %165 = vmatpush.msra.mxu3 %v80_v7  ;;  %v69_v12 = vld [vmem:[%s3316_s1 + $0x180] sm:$0xff]  ;;  %v70_v13 = vld [vmem:[%s3316_s1 + $0x188] sm:$0xff]  ;;  %v71_v14 = vld [vmem:[%s3316_s1 + $0x190] sm:$0xff] }
   0x6   :  { %97 = vmatpush.msra.mxu0 %v73_v8  ;;  %120 = vmatpush.msra.mxu1 %v74_v9  ;;  %v72_v15 = vld [vmem:[%s3316_s1 + $0x198] sm:$0xff]  ;;  %v65_v16 = vld [vmem:[%s3316_s1 + $0x160] sm:$0xff]  ;;  %v66_v17 = vld [vmem:[%s3316_s1 + $0x168] sm:$0xff] }
   0x7   :  { %143 = vmatpush.msra.mxu2 %v75_v10  ;;  %166 = vmatpush.msra.mxu3 %v76_v11  ;;  %v67_v18 = vld [vmem:[%s3316_s1 + $0x170] sm:$0xff]  ;;  %v68_v19 = vld [vmem:[%s3316_s1 + $0x178] sm:$0xff]  ;;  %v61_v20 = vld [vmem:[%s3316_s1 + $0x140] sm:$0xff] }
   0x8   :  { %98 = vmatpush.msra.mxu0 %v69_v12  ;;  %121 = vmatpush.msra.mxu1 %v70_v13  ;;  %v62_v21 = vld [vmem:[%s3316_s1 + $0x148] sm:$0xff]  ;;  %v63_v22 = vld [vmem:[%s3316_s1 + $0x150] sm:$0xff]  ;;  %v64_v23 = vld [vmem:[%s3316_s1 + $0x158] sm:$0xff] }
   0x9   :  { %144 = vmatpush.msra.mxu2 %v71_v14  ;;  %167 = vmatpush.msra.mxu3 %v72_v15  ;;  %v57_v24 = vld [vmem:[%s3316_s1 + $0x120] sm:$0xff]  ;;  %v58_v25 = vld [vmem:[%s3316_s1 + $0x128] sm:$0xff]  ;;  %v59_v26 = vld [vmem:[%s3316_s1 + $0x130] sm:$0xff] }
   0xa   :  { %99 = vmatpush.msra.mxu0 %v65_v16  ;;  %122 = vmatpush.msra.mxu1 %v66_v17  ;;  %v60_v27 = vld [vmem:[%s3316_s1 + $0x138] sm:$0xff]  ;;  %v53_v28 = vld [vmem:[%s3316_s1 + $0x100] sm:$0xff]  ;;  %v54_v29 = vld [vmem:[%s3316_s1 + $0x108] sm:$0xff] }
   0xb   :  { %145 = vmatpush.msra.mxu2 %v67_v18  ;;  %168 = vmatpush.msra.mxu3 %v68_v19  ;;  %v55_v30 = vld [vmem:[%s3316_s1 + $0x110] sm:$0xff]  ;;  %v56_v31 = vld [vmem:[%s3316_s1 + $0x118] sm:$0xff]  ;;  %v49_v32 = vld [vmem:[%s3316_s1 + $0xe0] sm:$0xff] }
   0xc   :  { %100 = vmatpush.msra.mxu0 %v61_v20  ;;  %123 = vmatpush.msra.mxu1 %v62_v21  ;;  %v50_v33 = vld [vmem:[%s3316_s1 + $0xe8] sm:$0xff]  ;;  %v51_v34 = vld [vmem:[%s3316_s1 + $0xf0] sm:$0xff]  ;;  %v52_v35 = vld [vmem:[%s3316_s1 + $0xf8] sm:$0xff] }
   0xd   :  { %146 = vmatpush.msra.mxu2 %v63_v22  ;;  %169 = vmatpush.msra.mxu3 %v64_v23  ;;  %v45_v36 = vld [vmem:[%s3316_s1 + $0xc0] sm:$0xff]  ;;  %v46_v37 = vld [vmem:[%s3316_s1 + $0xc8] sm:$0xff]  ;;  %v47_v38 = vld [vmem:[%s3316_s1 + $0xd0] sm:$0xff] }
   0xe   :  { %101 = vmatpush.msra.mxu0 %v57_v24  ;;  %124 = vmatpush.msra.mxu1 %v58_v25  ;;  %v48_v39 = vld [vmem:[%s3316_s1 + $0xd8] sm:$0xff]  ;;  %v41_v40 = vld [vmem:[%s3316_s1 + $0xa0] sm:$0xff]  ;;  %v42_v41 = vld [vmem:[%s3316_s1 + $0xa8] sm:$0xff] }
   0xf   :  { %147 = vmatpush.msra.mxu2 %v59_v26  ;;  %170 = vmatpush.msra.mxu3 %v60_v27  ;;  %v43_v42 = vld [vmem:[%s3316_s1 + $0xb0] sm:$0xff]  ;;  %v44_v43 = vld [vmem:[%s3316_s1 + $0xb8] sm:$0xff]  ;;  %v37_v44 = vld [vmem:[%s3316_s1 + $0x80] sm:$0xff] }
  0x10   :  { %102 = vmatpush.msra.mxu0 %v53_v28  ;;  %125 = vmatpush.msra.mxu1 %v54_v29  ;;  %v38_v45 = vld [vmem:[%s3316_s1 + $0x88] sm:$0xff]  ;;  %v39_v46 = vld [vmem:[%s3316_s1 + $0x90] sm:$0xff]  ;;  %v40_v47 = vld [vmem:[%s3316_s1 + $0x98] sm:$0xff] }
  0x11   :  { %148 = vmatpush.msra.mxu2 %v55_v30  ;;  %171 = vmatpush.msra.mxu3 %v56_v31  ;;  %v33_v48 = vld [vmem:[%s3316_s1 + $0x60] sm:$0xff]  ;;  %v34_v49 = vld [vmem:[%s3316_s1 + $0x68] sm:$0xff]  ;;  %v35_v50 = vld [vmem:[%s3316_s1 + $0x70] sm:$0xff] }
  0x12   :  { %103 = vmatpush.msra.mxu0 %v49_v32  ;;  %126 = vmatpush.msra.mxu1 %v50_v33  ;;  %v36_v51 = vld [vmem:[%s3316_s1 + $0x78] sm:$0xff]  ;;  %v29_v52 = vld [vmem:[%s3316_s1 + $0x40] sm:$0xff]  ;;  %v30_v53 = vld [vmem:[%s3316_s1 + $0x48] sm:$0xff] }
  0x13   :  { %149 = vmatpush.msra.mxu2 %v51_v34  ;;  %172 = vmatpush.msra.mxu3 %v52_v35  ;;  %v31_v54 = vld [vmem:[%s3316_s1 + $0x50] sm:$0xff]  ;;  %v32_v55 = vld [vmem:[%s3316_s1 + $0x58] sm:$0xff]  ;;  %v25_v56 = vld [vmem:[%s3316_s1 + $0x20] sm:$0xff] }
  0x14   :  { %104 = vmatpush.msra.mxu0 %v45_v36  ;;  %127 = vmatpush.msra.mxu1 %v46_v37  ;;  %v26_v57 = vld [vmem:[%s3316_s1 + $0x28] sm:$0xff]  ;;  %v27_v58 = vld [vmem:[%s3316_s1 + $0x30] sm:$0xff]  ;;  %v28_v59 = vld [vmem:[%s3316_s1 + $0x38] sm:$0xff] }
  0x15   :  { %150 = vmatpush.msra.mxu2 %v47_v38  ;;  %173 = vmatpush.msra.mxu3 %v48_v39  ;;  %v21_v60 = vld [vmem:[%s3316_s1] sm:$0xff]  ;;  %v22_v61 = vld [vmem:[%s3316_s1 + $0x8] sm:$0xff]  ;;  %v23_v62 = vld [vmem:[%s3316_s1 + $0x10] sm:$0xff] }
  0x16   :  { %105 = vmatpush.msra.mxu0 %v41_v40  ;;  %128 = vmatpush.msra.mxu1 %v42_v41  ;;  %v24_v63 = vld [vmem:[%s3316_s1 + $0x18] sm:$0xff]  ;;  %v1987_v0 = vld [vmem:[%s3317_s2 + $0x1e0] sm:$0xff]  ;;  %v1992_v1 = vld [vmem:[%s3317_s2 + $0x1e8] sm:$0xff] }
  0x17   :  { %151 = vmatpush.msra.mxu2 %v43_v42  ;;  %174 = vmatpush.msra.mxu3 %v44_v43  ;;  %v1997_v2 = vld [vmem:[%s3317_s2 + $0x1f0] sm:$0xff]  ;;  %v2002_v3 = vld [vmem:[%s3317_s2 + $0x1f8] sm:$0xff]  ;;  %v2007_v4 = vld [vmem:[%s3317_s2 + $0x1c0] sm:$0xff] }
  0x18   :  { %106 = vmatpush.msra.mxu0 %v37_v44  ;;  %129 = vmatpush.msra.mxu1 %v38_v45  ;;  %v2012_v5 = vld [vmem:[%s3317_s2 + $0x1c8] sm:$0xff]  ;;  %v2019_v6 = vld [vmem:[%s3317_s2 + $0x1d0] sm:$0xff]  ;;  %v2024_v7 = vld [vmem:[%s3317_s2 + $0x1d8] sm:$0xff] }
  0x19   :  { %152 = vmatpush.msra.mxu2 %v39_v46  ;;  %175 = vmatpush.msra.mxu3 %v40_v47  ;;  %v2031_v8 = vld [vmem:[%s3317_s2 + $0x1a0] sm:$0xff]  ;;  %v2036_v9 = vld [vmem:[%s3317_s2 + $0x1a8] sm:$0xff]  ;;  %v2043_v10 = vld [vmem:[%s3317_s2 + $0x1b0] sm:$0xff] }
  0x1a   :  { %107 = vmatpush.msra.mxu0 %v33_v48  ;;  %130 = vmatpush.msra.mxu1 %v34_v49  ;;  %v2048_v11 = vld [vmem:[%s3317_s2 + $0x1b8] sm:$0xff]  ;;  %v2055_v12 = vld [vmem:[%s3317_s2 + $0x180] sm:$0xff]  ;;  %v2060_v13 = vld [vmem:[%s3317_s2 + $0x188] sm:$0xff] }
  0x1b   :  { %153 = vmatpush.msra.mxu2 %v35_v50  ;;  %176 = vmatpush.msra.mxu3 %v36_v51  ;;  %v2067_v14 = vld [vmem:[%s3317_s2 + $0x190] sm:$0xff]  ;;  %v2072_v15 = vld [vmem:[%s3317_s2 + $0x198] sm:$0xff]  ;;  %v2079_v16 = vld [vmem:[%s3317_s2 + $0x160] sm:$0xff] }
  0x1c   :  { %108 = vmatpush.msra.mxu0 %v29_v52  ;;  %131 = vmatpush.msra.mxu1 %v30_v53  ;;  %v2084_v17 = vld [vmem:[%s3317_s2 + $0x168] sm:$0xff]  ;;  %v2091_v18 = vld [vmem:[%s3317_s2 + $0x170] sm:$0xff]  ;;  %v2096_v19 = vld [vmem:[%s3317_s2 + $0x178] sm:$0xff] }
  0x1d   :  { %154 = vmatpush.msra.mxu2 %v31_v54  ;;  %177 = vmatpush.msra.mxu3 %v32_v55  ;;  %v2103_v20 = vld [vmem:[%s3317_s2 + $0x140] sm:$0xff]  ;;  %v2108_v21 = vld [vmem:[%s3317_s2 + $0x148] sm:$0xff]  ;;  %v2115_v22 = vld [vmem:[%s3317_s2 + $0x150] sm:$0xff] }
  0x1e   :  { %109 = vmatpush.msra.mxu0 %v25_v56  ;;  %132 = vmatpush.msra.mxu1 %v26_v57  ;;  %v2120_v23 = vld [vmem:[%s3317_s2 + $0x158] sm:$0xff]  ;;  %v2127_v24 = vld [vmem:[%s3317_s2 + $0x120] sm:$0xff]  ;;  %v2132_v25 = vld [vmem:[%s3317_s2 + $0x128] sm:$0xff] }
  0x1f   :  { %155 = vmatpush.msra.mxu2 %v27_v58  ;;  %178 = vmatpush.msra.mxu3 %v28_v59  ;;  %v2139_v26 = vld [vmem:[%s3317_s2 + $0x130] sm:$0xff]  ;;  %v2144_v27 = vld [vmem:[%s3317_s2 + $0x138] sm:$0xff]  ;;  %v2151_v28 = vld [vmem:[%s3317_s2 + $0x100] sm:$0xff] }
  0x20   :  { %110 = vmatpush.msra.mxu0 %v21_v60  ;;  %133 = vmatpush.msra.mxu1 %v22_v61  ;;  %v2156_v29 = vld [vmem:[%s3317_s2 + $0x108] sm:$0xff]  ;;  %v2163_v30 = vld [vmem:[%s3317_s2 + $0x110] sm:$0xff]  ;;  %v2168_v31 = vld [vmem:[%s3317_s2 + $0x118] sm:$0xff] }
  0x21   :  { %156 = vmatpush.msra.mxu2 %v23_v62  ;;  %179 = vmatpush.msra.mxu3 %v24_v63  ;;  %v19_v32 = vld [vmem:[%s3318_s0] sm:$0xff]  ;;  %v2187_v34 = vld [vmem:[%s3317_s2 + $0xe8] sm:$0xff]  ;;  %v2192_v35 = vld [vmem:[%s3317_s2 + $0xf0] sm:$0xff] }
  0x22   :  { %263 = vmatpush.msrb.mxu0 %v1987_v0  ;;  %283 = vmatpush.msrb.mxu1 %v1992_v1  ;;  %v2182_v33 = vld [vmem:[%s3317_s2 + $0xe0] sm:$0xff]  ;;  %v2197_v36 = vld [vmem:[%s3317_s2 + $0xf8] sm:$0xff]  ;;  %v2207_v38 = vld [vmem:[%s3317_s2 + $0xc8] sm:$0xff] }
  0x23   :  { %303 = vmatpush.msrb.mxu2 %v1997_v2  ;;  %323 = vmatpush.msrb.mxu3 %v2002_v3  ;;  %v2202_v37 = vld [vmem:[%s3317_s2 + $0xc0] sm:$0xff]  ;;  %v2214_v39 = vld [vmem:[%s3317_s2 + $0xd0] sm:$0xff]  ;;  %v2219_v40 = vld [vmem:[%s3317_s2 + $0xd8] sm:$0xff] }
  0x24   :  { %264 = vmatpush.msrb.mxu0 %v2007_v4  ;;  %284 = vmatpush.msrb.mxu1 %v2012_v5  ;;  %v2226_v41 = vld [vmem:[%s3317_s2 + $0xa0] sm:$0xff]  ;;  %v2231_v42 = vld [vmem:[%s3317_s2 + $0xa8] sm:$0xff]  ;;  %v2238_v43 = vld [vmem:[%s3317_s2 + $0xb0] sm:$0xff] }
  0x25   :  { %304 = vmatpush.msrb.mxu2 %v2019_v6  ;;  %324 = vmatpush.msrb.mxu3 %v2024_v7  ;;  %v2243_v44 = vld [vmem:[%s3317_s2 + $0xb8] sm:$0xff]  ;;  %v2250_v45 = vld [vmem:[%s3317_s2 + $0x80] sm:$0xff]  ;;  %v2255_v46 = vld [vmem:[%s3317_s2 + $0x88] sm:$0xff] }
  0x26   :  { %265 = vmatpush.msrb.mxu0 %v2031_v8  ;;  %285 = vmatpush.msrb.mxu1 %v2036_v9  ;;  %v2262_v47 = vld [vmem:[%s3317_s2 + $0x90] sm:$0xff]  ;;  %v2267_v48 = vld [vmem:[%s3317_s2 + $0x98] sm:$0xff]  ;;  %v20_v49 = vld [vmem:[%s3318_s0 + $0x8] sm:$0xff] }
  0x27   :  { %305 = vmatpush.msrb.mxu2 %v2043_v10  ;;  %325 = vmatpush.msrb.mxu3 %v2048_v11  ;;  %v2281_v50 = vld [vmem:[%s3317_s2 + $0x60] sm:$0xff]  ;;  %v2286_v51 = vld [vmem:[%s3317_s2 + $0x68] sm:$0xff]  ;;  %v2291_v52 = vld [vmem:[%s3317_s2 + $0x70] sm:$0xff] }
  0x28   :  { %266 = vmatpush.msrb.mxu0 %v2055_v12  ;;  %286 = vmatpush.msrb.mxu1 %v2060_v13  ;;  %v2296_v53 = vld [vmem:[%s3317_s2 + $0x78] sm:$0xff]  ;;  %v2301_v54 = vld [vmem:[%s3317_s2 + $0x40] sm:$0xff]  ;;  %v2306_v55 = vld [vmem:[%s3317_s2 + $0x48] sm:$0xff] }
  0x29   :  { %306 = vmatpush.msrb.mxu2 %v2067_v14  ;;  %326 = vmatpush.msrb.mxu3 %v2072_v15  ;;  %v2313_v56 = vld [vmem:[%s3317_s2 + $0x50] sm:$0xff]  ;;  %v2318_v57 = vld [vmem:[%s3317_s2 + $0x58] sm:$0xff]  ;;  %v2325_v58 = vld [vmem:[%s3317_s2 + $0x20] sm:$0xff] }
  0x2a   :  { %267 = vmatpush.msrb.mxu0 %v2079_v16  ;;  %287 = vmatpush.msrb.mxu1 %v2084_v17  ;;  %v2330_v59 = vld [vmem:[%s3317_s2 + $0x28] sm:$0xff]  ;;  %v2337_v60 = vld [vmem:[%s3317_s2 + $0x30] sm:$0xff]  ;;  %v2342_v61 = vld [vmem:[%s3317_s2 + $0x38] sm:$0xff] }
  0x2b   :  { %307 = vmatpush.msrb.mxu2 %v2091_v18  ;;  %327 = vmatpush.msrb.mxu3 %v2096_v19  ;;  %3367 = vst [vmem:[#allocation3_spill] sm:$0xff] %v2330_v59  ;;  %v2349_v62 = vld [vmem:[%s3317_s2] sm:$0xff]  ;;  %v2354_v63 = vld [vmem:[%s3317_s2 + $0x8] sm:$0xff] }
  0x2c   :  { %268 = vmatpush.msrb.mxu0 %v2103_v20  ;;  %288 = vmatpush.msrb.mxu1 %v2108_v21 }
  0x2d   :  { %308 = vmatpush.msrb.mxu2 %v2115_v22  ;;  %328 = vmatpush.msrb.mxu3 %v2120_v23 }
  0x2e   :  { %269 = vmatpush.msrb.mxu0 %v2127_v24  ;;  %289 = vmatpush.msrb.mxu1 %v2132_v25 }
  0x2f   :  { %309 = vmatpush.msrb.mxu2 %v2139_v26  ;;  %329 = vmatpush.msrb.mxu3 %v2144_v27 }
  0x30   :  { %270 = vmatpush.msrb.mxu0 %v2151_v28  ;;  %290 = vmatpush.msrb.mxu1 %v2156_v29 }
  0x31   :  { %310 = vmatpush.msrb.mxu2 %v2163_v30  ;;  %330 = vmatpush.msrb.mxu3 %v2168_v31 }
  0x32   :  { %111 = vmatmul.f32.vlgmr.msra.gmra.mxu0 %v19_v32  ;;  %134 = vmatmul.f32.vlgmr.msra.gmra.mxu1 %v19_v32 }
  0x33   :  { %157 = vmatmul.f32.vlgmr.msra.gmra.mxu2 %v19_v32  ;;  %180 = vmatmul.f32.vlgmr.msra.gmra.mxu3 %v19_v32  ;;  %v2361_v32 = vld [vmem:[%s3317_s2 + $0x10] sm:$0xff] }
  0x34   :  { %271 = vmatpush.msrb.mxu0 %v2182_v33  ;;  %291 = vmatpush.msrb.mxu1 %v2187_v34 }
  0x35   :  { %311 = vmatpush.msrb.mxu2 %v2192_v35  ;;  %331 = vmatpush.msrb.mxu3 %v2197_v36 }
  0x36   :  { %272 = vmatpush.msrb.mxu0 %v2202_v37  ;;  %292 = vmatpush.msrb.mxu1 %v2207_v38 }
  0x37   :  { %312 = vmatpush.msrb.mxu2 %v2214_v39  ;;  %332 = vmatpush.msrb.mxu3 %v2219_v40 }
  0x38   :  { %273 = vmatpush.msrb.mxu0 %v2226_v41  ;;  %293 = vmatpush.msrb.mxu1 %v2231_v42 }
  0x39   :  { %313 = vmatpush.msrb.mxu2 %v2238_v43  ;;  %333 = vmatpush.msrb.mxu3 %v2243_v44 }
  0x3a   :  { %274 = vmatpush.msrb.mxu0 %v2250_v45  ;;  %294 = vmatpush.msrb.mxu1 %v2255_v46 }
  0x3b   :  { %314 = vmatpush.msrb.mxu2 %v2262_v47  ;;  %334 = vmatpush.msrb.mxu3 %v2267_v48 }
  0x3c   :  { %114 = vmatmul.f32.gmra.mxu0 %v20_v49  ;;  %137 = vmatmul.f32.gmra.mxu1 %v20_v49 }
  0x3d   :  { %160 = vmatmul.f32.gmra.mxu2 %v20_v49  ;;  %183 = vmatmul.f32.gmra.mxu3 %v20_v49  ;;  %v2366_v49 = vld [vmem:[%s3317_s2 + $0x18] sm:$0xff] }
  0x3e   :  { %275 = vmatpush.msrb.mxu0 %v2281_v50  ;;  %295 = vmatpush.msrb.mxu1 %v2286_v51 }
  0x3f   :  { %315 = vmatpush.msrb.mxu2 %v2291_v52  ;;  %335 = vmatpush.msrb.mxu3 %v2296_v53 }
  0x40   :  { %276 = vmatpush.msrb.mxu0 %v2301_v54  ;;  %296 = vmatpush.msrb.mxu1 %v2306_v55 }
  0x41   :  { %316 = vmatpush.msrb.mxu2 %v2313_v56  ;;  %336 = vmatpush.msrb.mxu3 %v2318_v57 }
  0x42   :  { %277 = vmatpush.msrb.mxu0 %v2325_v58  ;;  %297 = vmatpush.msrb.mxu1 %v2330_v59  ;;  %v1761_v59 = vmov 0.0  }
  0x43   :  { %317 = vmatpush.msrb.mxu2 %v2337_v60  ;;  %337 = vmatpush.msrb.mxu3 %v2342_v61 }
  0x44   :  { %278 = vmatpush.msrb.mxu0 %v2349_v62  ;;  %298 = vmatpush.msrb.mxu1 %v2354_v63 }
  0x45   :  { %318 = vmatpush.msrb.mxu2 %v2361_v32  ;;  %338 = vmatpush.msrb.mxu3 %v2366_v49 }
  0x46   :  { %279 = vmatmul.f32.vlgmr.msrb.gmra.mxu0 %v1761_v59  ;;  %299 = vmatmul.f32.vlgmr.msrb.gmra.mxu1 %v1761_v59 }
  0x47   :  { %319 = vmatmul.f32.vlgmr.msrb.gmra.mxu2 %v1761_v59  ;;  %339 = vmatmul.f32.vlgmr.msrb.gmra.mxu3 %v1761_v59  ;;  %v3368_v59 = vld [vmem:[#allocation3_spill] sm:$0xff] }
  0x48   :  { %434 = vmatpush.msra.mxu0 %v1987_v0  ;;  %454 = vmatpush.msra.mxu1 %v1992_v1 }
  0x49   :  { %474 = vmatpush.msra.mxu2 %v1997_v2  ;;  %494 = vmatpush.msra.mxu3 %v2002_v3 }
  0x4a   :  { %435 = vmatpush.msra.mxu0 %v2007_v4  ;;  %455 = vmatpush.msra.mxu1 %v2012_v5 }
  0x4b   :  { %475 = vmatpush.msra.mxu2 %v2019_v6  ;;  %495 = vmatpush.msra.mxu3 %v2024_v7 }
  0x4c   :  { %436 = vmatpush.msra.mxu0 %v2031_v8  ;;  %456 = vmatpush.msra.mxu1 %v2036_v9 }
  0x4d   :  { %476 = vmatpush.msra.mxu2 %v2043_v10  ;;  %496 = vmatpush.msra.mxu3 %v2048_v11 }
  0x4e   :  { %437 = vmatpush.msra.mxu0 %v2055_v12  ;;  %457 = vmatpush.msra.mxu1 %v2060_v13 }
  0x4f   :  { %477 = vmatpush.msra.mxu2 %v2067_v14  ;;  %497 = vmatpush.msra.mxu3 %v2072_v15 }
  0x50   :  { %438 = vmatpush.msra.mxu0 %v2079_v16  ;;  %458 = vmatpush.msra.mxu1 %v2084_v17 }
  0x51   :  { %478 = vmatpush.msra.mxu2 %v2091_v18  ;;  %498 = vmatpush.msra.mxu3 %v2096_v19 }
  0x52   :  { %439 = vmatpush.msra.mxu0 %v2103_v20  ;;  %459 = vmatpush.msra.mxu1 %v2108_v21 }
  0x53   :  { %479 = vmatpush.msra.mxu2 %v2115_v22  ;;  %499 = vmatpush.msra.mxu3 %v2120_v23 }
  0x54   :  { %440 = vmatpush.msra.mxu0 %v2127_v24  ;;  %460 = vmatpush.msra.mxu1 %v2132_v25 }
  0x55   :  { %480 = vmatpush.msra.mxu2 %v2139_v26  ;;  %500 = vmatpush.msra.mxu3 %v2144_v27 }
  0x56   :  { %441 = vmatpush.msra.mxu0 %v2151_v28  ;;  %461 = vmatpush.msra.mxu1 %v2156_v29 }
  0x57   :  { %481 = vmatpush.msra.mxu2 %v2163_v30  ;;  %501 = vmatpush.msra.mxu3 %v2168_v31 }
  0x58   :  { %442 = vmatpush.msra.mxu0 %v2182_v33  ;;  %462 = vmatpush.msra.mxu1 %v2187_v34 }
  0x59   :  { %482 = vmatpush.msra.mxu2 %v2192_v35  ;;  %502 = vmatpush.msra.mxu3 %v2197_v36 }
  0x5a   :  { %443 = vmatpush.msra.mxu0 %v2202_v37  ;;  %463 = vmatpush.msra.mxu1 %v2207_v38 }
  0x5b   :  { %483 = vmatpush.msra.mxu2 %v2214_v39  ;;  %503 = vmatpush.msra.mxu3 %v2219_v40 }
  0x5c   :  { %444 = vmatpush.msra.mxu0 %v2226_v41  ;;  %464 = vmatpush.msra.mxu1 %v2231_v42 }
  0x5d   :  { %484 = vmatpush.msra.mxu2 %v2238_v43  ;;  %504 = vmatpush.msra.mxu3 %v2243_v44 }
  0x5e   :  { %445 = vmatpush.msra.mxu0 %v2250_v45  ;;  %465 = vmatpush.msra.mxu1 %v2255_v46 }
  0x5f   :  { %485 = vmatpush.msra.mxu2 %v2262_v47  ;;  %505 = vmatpush.msra.mxu3 %v2267_v48 }
  0x60   :  { %446 = vmatpush.msra.mxu0 %v2281_v50  ;;  %466 = vmatpush.msra.mxu1 %v2286_v51 }
  0x61   :  { %486 = vmatpush.msra.mxu2 %v2291_v52  ;;  %506 = vmatpush.msra.mxu3 %v2296_v53 }
  0x62   :  { %447 = vmatpush.msra.mxu0 %v2301_v54  ;;  %467 = vmatpush.msra.mxu1 %v2306_v55 }
  0x63   :  { %487 = vmatpush.msra.mxu2 %v2313_v56  ;;  %507 = vmatpush.msra.mxu3 %v2318_v57 }
  0x64   :  { %448 = vmatpush.msra.mxu0 %v2325_v58  ;;  %468 = vmatpush.msra.mxu1 %v3368_v59 }
  0x65   :  { %488 = vmatpush.msra.mxu2 %v2337_v60  ;;  %508 = vmatpush.msra.mxu3 %v2342_v61 }
  0x66   :  { %449 = vmatpush.msra.mxu0 %v2349_v62  ;;  %469 = vmatpush.msra.mxu1 %v2354_v63 }
  0x67   :  { %489 = vmatpush.msra.mxu2 %v2361_v32  ;;  %509 = vmatpush.msra.mxu3 %v2366_v49 }
  0x68   :  { %623 = vmatpush.msrb.mxu0 %v1987_v0  ;;  %643 = vmatpush.msrb.mxu1 %v1992_v1  ;;  %v85_v0 = vld [vmem:[%s3319_s3] sm:$0xf] }
  0x69   :  { %663 = vmatpush.msrb.mxu2 %v1997_v2  ;;  %683 = vmatpush.msrb.mxu3 %v2002_v3  ;;  %v87_v1 = vperm.slane %v85_v0, 0  ;;  %v88_v2 = vperm.slane %v85_v0, 1 }
  0x6a   :  { %624 = vmatpush.msrb.mxu0 %v2007_v4  ;;  %644 = vmatpush.msrb.mxu1 %v2012_v5 }
  0x6b   :  { %664 = vmatpush.msrb.mxu2 %v2019_v6  ;;  %684 = vmatpush.msrb.mxu3 %v2024_v7  ;;  %v89_v7 = vperm.slane %v85_v0, 2 }
  0x6c   :  { %625 = vmatpush.msrb.mxu0 %v2031_v8  ;;  %645 = vmatpush.msrb.mxu1 %v2036_v9  ;;  %v90_v8 = vperm.slane %v85_v0, 3 }
  0x6d   :  { %665 = vmatpush.msrb.mxu2 %v2043_v10  ;;  %685 = vmatpush.msrb.mxu3 %v2048_v11 }
  0x6e   :  { %626 = vmatpush.msrb.mxu0 %v2055_v12  ;;  %646 = vmatpush.msrb.mxu1 %v2060_v13 }
  0x6f   :  { %666 = vmatpush.msrb.mxu2 %v2067_v14  ;;  %686 = vmatpush.msrb.mxu3 %v2072_v15 }
  0x70   :  { %627 = vmatpush.msrb.mxu0 %v2079_v16  ;;  %647 = vmatpush.msrb.mxu1 %v2084_v17 }
  0x71   :  { %667 = vmatpush.msrb.mxu2 %v2091_v18  ;;  %687 = vmatpush.msrb.mxu3 %v2096_v19 }
  0x72   :  { %628 = vmatpush.msrb.mxu0 %v2103_v20  ;;  %648 = vmatpush.msrb.mxu1 %v2108_v21 }
  0x73   :  { %668 = vmatpush.msrb.mxu2 %v2115_v22  ;;  %688 = vmatpush.msrb.mxu3 %v2120_v23 }
  0x74   :  { %629 = vmatpush.msrb.mxu0 %v2127_v24  ;;  %649 = vmatpush.msrb.mxu1 %v2132_v25 }
  0x75   :  { %669 = vmatpush.msrb.mxu2 %v2139_v26  ;;  %689 = vmatpush.msrb.mxu3 %v2144_v27 }
  0x76   :  { %630 = vmatpush.msrb.mxu0 %v2151_v28  ;;  %650 = vmatpush.msrb.mxu1 %v2156_v29 }
  0x77   :  { %670 = vmatpush.msrb.mxu2 %v2163_v30  ;;  %690 = vmatpush.msrb.mxu3 %v2168_v31 }
  0x78   :  { %631 = vmatpush.msrb.mxu0 %v2182_v33  ;;  %651 = vmatpush.msrb.mxu1 %v2187_v34 }
  0x79   :  { %671 = vmatpush.msrb.mxu2 %v2192_v35  ;;  %691 = vmatpush.msrb.mxu3 %v2197_v36 }
  0x7a   :  { %632 = vmatpush.msrb.mxu0 %v2202_v37  ;;  %652 = vmatpush.msrb.mxu1 %v2207_v38 }
  0x7b   :  { %672 = vmatpush.msrb.mxu2 %v2214_v39  ;;  %692 = vmatpush.msrb.mxu3 %v2219_v40 }
  0x7c   :  { %633 = vmatpush.msrb.mxu0 %v2226_v41  ;;  %653 = vmatpush.msrb.mxu1 %v2231_v42 }
  0x7d   :  { %673 = vmatpush.msrb.mxu2 %v2238_v43  ;;  %693 = vmatpush.msrb.mxu3 %v2243_v44 }
  0x7e   :  { %634 = vmatpush.msrb.mxu0 %v2250_v45  ;;  %654 = vmatpush.msrb.mxu1 %v2255_v46 }
  0x7f   :  { %674 = vmatpush.msrb.mxu2 %v2262_v47  ;;  %694 = vmatpush.msrb.mxu3 %v2267_v48 }
  0x80   :  { %635 = vmatpush.msrb.mxu0 %v2281_v50  ;;  %655 = vmatpush.msrb.mxu1 %v2286_v51 }
  0x81   :  { %675 = vmatpush.msrb.mxu2 %v2291_v52  ;;  %695 = vmatpush.msrb.mxu3 %v2296_v53 }
  0x82   :  { %636 = vmatpush.msrb.mxu0 %v2301_v54  ;;  %656 = vmatpush.msrb.mxu1 %v2306_v55 }
  0x83   :  { %676 = vmatpush.msrb.mxu2 %v2313_v56  ;;  %696 = vmatpush.msrb.mxu3 %v2318_v57 }
  0x84   :  { %637 = vmatpush.msrb.mxu0 %v2325_v58  ;;  %657 = vmatpush.msrb.mxu1 %v3368_v59 }
  0x85   :  { %677 = vmatpush.msrb.mxu2 %v2337_v60  ;;  %697 = vmatpush.msrb.mxu3 %v2342_v61 }
  0x86   :  { %638 = vmatpush.msrb.mxu0 %v2349_v62  ;;  %658 = vmatpush.msrb.mxu1 %v2354_v63 }
  0x87   :  { %678 = vmatpush.msrb.mxu2 %v2361_v32  ;;  %698 = vmatpush.msrb.mxu3 %v2366_v49 }
  0xaf   :  { %v112_v3 = vpop.f32.mrf.mxu0  ;;  %v135_v4 = vpop.f32.mrf.mxu1 }
  0xb0   :  { %v113_v5 = vadd.f32 %v112_v3, %v87_v1  ;;  %v136_v6 = vadd.f32 %v135_v4, %v88_v2 }
  0xb2   :  { %187 = vst [vmem:[#allocation2 + $0x30] sm:$0xff] %v113_v5 }
  0xb3   :  { %188 = vst [vmem:[#allocation2] sm:$0xff] %v136_v6 }
  0xb6   :  { %v158_v9 = vpop.f32.mrf.mxu2  ;;  %v181_v10 = vpop.f32.mrf.mxu3 }
  0xb7   :  { %v159_v11 = vadd.f32 %v158_v9, %v89_v7  ;;  %v182_v12 = vadd.f32 %v181_v10, %v90_v8 }
  0xb9   :  { %189 = vst [vmem:[#allocation2 + $0x18] sm:$0xff] %v159_v11  ;;  %v115_v13 = vpop.f32.mrf.mxu0  ;;  %v138_v14 = vpop.f32.mrf.mxu1  ;;  %v195_v21 = vld [vmem:[#allocation2 + $0x30] sm:$0x3]  ;;  %v366_v57 = vld [vmem:[#allocation2 + $0x30] sm:$0xc] }
  0xba   :  { %190 = vst [vmem:[#allocation2 + $0x10] sm:$0xff] %v182_v12  ;;  %v116_v15 = vadd.f32 %v115_v13, %v87_v1  ;;  %v139_v16 = vadd.f32 %v138_v14, %v88_v2  ;;  %v196_v23 = vld [vmem:[#allocation2] sm:$0x3]  ;;  %v367_v58 = vld [vmem:[#allocation2] sm:$0xc] }
  0xbc   :  { %191 = vst [vmem:[#allocation2 + $0x8] sm:$0xff] %v116_v15 }
  0xbd   :  { %192 = vst [vmem:[#allocation2 + $0x20] sm:$0xff] %v139_v16 }
  0xc0   :  { %v161_v17 = vpop.f32.mrf.mxu2  ;;  %v184_v18 = vpop.f32.mrf.mxu3  ;;  %v197_v30 = vld [vmem:[#allocation2 + $0x18] sm:$0x3]  ;;  %v368_v1 = vld [vmem:[#allocation2 + $0x18] sm:$0xc] }
  0xc1   :  { %v162_v19 = vadd.f32 %v161_v17, %v89_v7  ;;  %v185_v20 = vadd.f32 %v184_v18, %v90_v8  ;;  %v198_v29 = vld [vmem:[#allocation2 + $0x10] sm:$0x3]  ;;  %v369_v2 = vld [vmem:[#allocation2 + $0x10] sm:$0xc] }
  0xc3   :  { %193 = vst [vmem:[#allocation2 + $0x28] sm:$0xff] %v162_v19  ;;  %v280_v22 = vpop.f32.mrf.mxu0  ;;  %v300_v24 = vpop.f32.mrf.mxu1 }
  0xc4   :  { %194 = vst [vmem:[#allocation2 + $0x38] sm:$0xff] %v185_v20  ;;  %v343_v25 = vadd.f32 %v280_v22, %v195_v21  ;;  %v344_v26 = vadd.f32 %v300_v24, %v196_v23  ;;  %v2517_v23 = vld [vmem:[%s3317_s2 + $0x1e0] sm:$0xff]  ;;  %v2522_v24 = vld [vmem:[%s3317_s2 + $0x1e8] sm:$0xff] }
  0xc6   :  { %v347_v27 = vmul.f32 0.5, %v343_v25  ;;  %v351_v28 = vmul.f32 0.5, %v344_v26  ;;  %v2527_v25 = vld [vmem:[%s3317_s2 + $0x1f0] sm:$0xff]  ;;  %v2534_v26 = vld [vmem:[%s3317_s2 + $0x1f8] sm:$0xff] }
  0xc8   :  { %1681 = vtanh.f32 %v347_v27  ;;  %v2541_v27 = vld [vmem:[%s3317_s2 + $0x1c0] sm:$0xff] }
  0xc9   :  { %1683 = vtanh.f32 %v351_v28  ;;  %v2546_v28 = vld [vmem:[%s3317_s2 + $0x1c8] sm:$0xff] }
  0xca   :  { %v320_v31 = vpop.f32.mrf.mxu2  ;;  %v340_v33 = vpop.f32.mrf.mxu3 }
  0xcb   :  { %v345_v34 = vadd.f32 %v320_v31, %v197_v30  ;;  %v346_v35 = vadd.f32 %v340_v33, %v198_v29  ;;  %v2551_v29 = vld [vmem:[%s3317_s2 + $0x1d0] sm:$0xff]  ;;  %v2558_v30 = vld [vmem:[%s3317_s2 + $0x1d8] sm:$0xff]  ;;  %v2565_v31 = vld [vmem:[%s3317_s2 + $0x1a0] sm:$0xff] }
  0xcc   :  { %3369 = vst [vmem:[#allocation3_spill] sm:$0xff] %v2558_v30  ;;  %v2570_v33 = vld [vmem:[%s3317_s2 + $0x1a8] sm:$0xff] }
  0xcd   :  { %1685 = vtanh.f32 %v345_v34  ;;  %v356_v36 = vmul.f32 0.5, %v346_v35  ;;  %v2575_v34 = vld [vmem:[%s3317_s2 + $0x1b0] sm:$0xff]  ;;  %v2582_v35 = vld [vmem:[%s3317_s2 + $0x1b8] sm:$0xff] }
  0xce   :  { %v1682_v37 = vpop.eup %1681 }
  0xcf   :  { %v1684_v38 = vpop.eup %1683  ;;  %v349_v39 = vadd.f32 1.0, %v1682_v37  ;;  %1687 = vtanh.f32 %v356_v36  ;;  %v2589_v36 = vld [vmem:[%s3317_s2 + $0x180] sm:$0xff]  ;;  %v2594_v37 = vld [vmem:[%s3317_s2 + $0x188] sm:$0xff] }
  0xd0   :  { %v353_v40 = vadd.f32 1.0, %v1684_v38  ;;  %v2599_v38 = vld [vmem:[%s3317_s2 + $0x190] sm:$0xff] }
  0xd1   :  { %v350_v41 = vmul.f32 0.5, %v349_v39  ;;  %v2606_v39 = vld [vmem:[%s3317_s2 + $0x198] sm:$0xff] }
  0xd2   :  { %v354_v42 = vmul.f32 0.5, %v353_v40  ;;  %v2613_v40 = vld [vmem:[%s3317_s2 + $0x160] sm:$0xff] }
  0xd3   :  { %v1686_v43 = vpop.eup %1685 }
  0xd4   :  { %v360_v44 = vmul.f32 0.0, %v354_v42  ;;  %v361_v45 = vmul.f32 %v1686_v43, %v350_v41  ;;  %v2618_v41 = vld [vmem:[%s3317_s2 + $0x168] sm:$0xff]  ;;  %v2623_v42 = vld [vmem:[%s3317_s2 + $0x170] sm:$0xff]  ;;  %v2630_v43 = vld [vmem:[%s3317_s2 + $0x178] sm:$0xff] }
  0xd5   :  { %v1688_v46 = vpop.eup %1687 }
  0xd6   :  { %v362_v47 = vadd.f32 %v361_v45, %v360_v44  ;;  %v358_v48 = vadd.f32 1.0, %v1688_v46  ;;  %v2637_v44 = vld [vmem:[%s3317_s2 + $0x140] sm:$0xff]  ;;  %v2642_v45 = vld [vmem:[%s3317_s2 + $0x148] sm:$0xff]  ;;  %v2647_v46 = vld [vmem:[%s3317_s2 + $0x150] sm:$0xff] }
  0xd8   :  { %1689 = vtanh.f32 %v362_v47  ;;  %v359_v50 = vmul.f32 0.5, %v358_v48  ;;  %v544_v12 = vrot.slane %v362_v47, 6  ;;  %v2654_v47 = vld [vmem:[%s3317_s2 + $0x158] sm:$0xff]  ;;  %v2661_v48 = vld [vmem:[%s3317_s2 + $0x120] sm:$0xff] }
  0xde   :  { %v1690_v51 = vpop.eup %1689 }
  0xdf   :  { %v364_v52 = vmul.f32 %v1690_v51, %v359_v50  ;;  %v2666_v50 = vld [vmem:[%s3317_s2 + $0x128] sm:$0xff]  ;;  %v2671_v51 = vld [vmem:[%s3317_s2 + $0x130] sm:$0xff] }
  0xe1   :  { %365 = vst [vmem:[%s3320_s4] sm:$0x3] %v364_v52  ;;  %450 = vmatmul.f32.vlgmr.msra.gmra.mxu0 %v364_v52  ;;  %470 = vmatmul.f32.vlgmr.msra.gmra.mxu1 %v364_v52 }
  0xe2   :  { %490 = vmatmul.f32.vlgmr.msra.gmra.mxu2 %v364_v52  ;;  %510 = vmatmul.f32.vlgmr.msra.gmra.mxu3 %v364_v52  ;;  %v2678_v52 = vld [vmem:[%s3317_s2 + $0x138] sm:$0xff] }
  0xe3   :  { %812 = vmatpush.msra.mxu0 %v2517_v23  ;;  %832 = vmatpush.msra.mxu1 %v2522_v24 }
  0xe4   :  { %852 = vmatpush.msra.mxu2 %v2527_v25  ;;  %872 = vmatpush.msra.mxu3 %v2534_v26 }
  0xe5   :  { %813 = vmatpush.msra.mxu0 %v2541_v27  ;;  %833 = vmatpush.msra.mxu1 %v2546_v28 }
  0xe6   :  { %853 = vmatpush.msra.mxu2 %v2551_v29  ;;  %873 = vmatpush.msra.mxu3 %v2558_v30 }
  0xe7   :  { %814 = vmatpush.msra.mxu0 %v2565_v31  ;;  %834 = vmatpush.msra.mxu1 %v2570_v33 }
  0xe8   :  { %854 = vmatpush.msra.mxu2 %v2575_v34  ;;  %874 = vmatpush.msra.mxu3 %v2582_v35 }
  0xe9   :  { %815 = vmatpush.msra.mxu0 %v2589_v36  ;;  %835 = vmatpush.msra.mxu1 %v2594_v37 }
  0xea   :  { %855 = vmatpush.msra.mxu2 %v2599_v38  ;;  %875 = vmatpush.msra.mxu3 %v2606_v39 }
  0xeb   :  { %816 = vmatpush.msra.mxu0 %v2613_v40  ;;  %836 = vmatpush.msra.mxu1 %v2618_v41 }
  0xec   :  { %856 = vmatpush.msra.mxu2 %v2623_v42  ;;  %876 = vmatpush.msra.mxu3 %v2630_v43 }
  0xed   :  { %817 = vmatpush.msra.mxu0 %v2637_v44  ;;  %837 = vmatpush.msra.mxu1 %v2642_v45 }
  0xee   :  { %857 = vmatpush.msra.mxu2 %v2647_v46  ;;  %877 = vmatpush.msra.mxu3 %v2654_v47 }
  0xef   :  { %818 = vmatpush.msra.mxu0 %v2661_v48  ;;  %838 = vmatpush.msra.mxu1 %v2666_v50 }
  0xf0   :  { %858 = vmatpush.msra.mxu2 %v2671_v51  ;;  %878 = vmatpush.msra.mxu3 %v2678_v52 }
 0x15e   :  { %v451_v53 = vpop.f32.mrf.mxu0  ;;  %v471_v54 = vpop.f32.mrf.mxu1 }
 0x15f   :  { %v518_v55 = vrot.slane %v451_v53, 6  ;;  %v519_v56 = vrot.slane %v471_v54, 6  ;;  %v2685_v53 = vld [vmem:[%s3317_s2 + $0x100] sm:$0xff]  ;;  %v2690_v54 = vld [vmem:[%s3317_s2 + $0x108] sm:$0xff] }
 0x160   :  { %819 = vmatpush.msra.mxu0 %v2685_v53  ;;  %839 = vmatpush.msra.mxu1 %v2690_v54 }
 0x161   :  { %v526_v60 = vadd.f32 %v518_v55, %v366_v57  ;;  %v527_v61 = vadd.f32 %v519_v56, %v367_v58  ;;  %v2695_v55 = vld [vmem:[%s3317_s2 + $0x110] sm:$0xff]  ;;  %v2702_v56 = vld [vmem:[%s3317_s2 + $0x118] sm:$0xff]  ;;  %v2709_v57 = vld [vmem:[%s3317_s2 + $0xe0] sm:$0xff] }
 0x162   :  { %859 = vmatpush.msra.mxu2 %v2695_v55  ;;  %879 = vmatpush.msra.mxu3 %v2702_v56  ;;  %v2714_v58 = vld [vmem:[%s3317_s2 + $0xe8] sm:$0xff] }
 0x163   :  { %v530_v62 = vmul.f32 0.5, %v526_v60  ;;  %v534_v63 = vmul.f32 0.5, %v527_v61  ;;  %v2719_v60 = vld [vmem:[%s3317_s2 + $0xf0] sm:$0xff]  ;;  %820 = vmatpush.msra.mxu0 %v2709_v57  ;;  %840 = vmatpush.msra.mxu1 %v2714_v58  ;;  %v2726_v61 = vld [vmem:[%s3317_s2 + $0xf8] sm:$0xff] }
 0x164   :  { %860 = vmatpush.msra.mxu2 %v2719_v60  ;;  %880 = vmatpush.msra.mxu3 %v2726_v61 }
 0x165   :  { %1691 = vtanh.f32 %v530_v62  ;;  %v491_v32 = vpop.f32.mrf.mxu2  ;;  %v511_v49 = vpop.f32.mrf.mxu3  ;;  %v2733_v62 = vld [vmem:[%s3317_s2 + $0xc0] sm:$0xff] }
 0x166   :  { %1693 = vtanh.f32 %v534_v63  ;;  %v520_v59 = vrot.slane %v491_v32, 6  ;;  %v521_v0 = vrot.slane %v511_v49, 6  ;;  %v2738_v63 = vld [vmem:[%s3317_s2 + $0xc8] sm:$0xff]  ;;  %v2743_v32 = vld [vmem:[%s3317_s2 + $0xd0] sm:$0xff]  ;;  %821 = vmatpush.msra.mxu0 %v2733_v62  ;;  %v2750_v49 = vld [vmem:[%s3317_s2 + $0xd8] sm:$0xff] }
 0x167   :  { %841 = vmatpush.msra.mxu1 %v2738_v63  ;;  %861 = vmatpush.msra.mxu2 %v2743_v32 }
 0x168   :  { %v528_v3 = vadd.f32 %v520_v59, %v368_v1  ;;  %v529_v4 = vadd.f32 %v521_v0, %v369_v2  ;;  %881 = vmatpush.msra.mxu3 %v2750_v49  ;;  %v2757_v59 = vld [vmem:[%s3317_s2 + $0xa0] sm:$0xff]  ;;  %v2762_v0 = vld [vmem:[%s3317_s2 + $0xa8] sm:$0xff]  ;;  %v2767_v1 = vld [vmem:[%s3317_s2 + $0xb0] sm:$0xff] }
 0x169   :  { %822 = vmatpush.msra.mxu0 %v2757_v59  ;;  %842 = vmatpush.msra.mxu1 %v2762_v0  ;;  %v2774_v2 = vld [vmem:[%s3317_s2 + $0xb8] sm:$0xff] }
 0x16a   :  { %1695 = vtanh.f32 %v528_v3  ;;  %v539_v5 = vmul.f32 0.5, %v529_v4  ;;  %3370 = vst [vmem:[#allocation4_spill] sm:$0xff] %v2774_v2  ;;  %862 = vmatpush.msra.mxu2 %v2767_v1  ;;  %882 = vmatpush.msra.mxu3 %v2774_v2  ;;  %v2781_v3 = vld [vmem:[%s3317_s2 + $0x80] sm:$0xff]  ;;  %v2786_v4 = vld [vmem:[%s3317_s2 + $0x88] sm:$0xff] }
 0x16b   :  { %v1692_v6 = vpop.eup %1691  ;;  %3371 = vst [vmem:[#allocation5_spill] sm:$0xff] %v2781_v3  ;;  %823 = vmatpush.msra.mxu0 %v2781_v3  ;;  %843 = vmatpush.msra.mxu1 %v2786_v4 }
 0x16c   :  { %v1694_v7 = vpop.eup %1693  ;;  %v532_v8 = vadd.f32 1.0, %v1692_v6  ;;  %1697 = vtanh.f32 %v539_v5  ;;  %3372 = vst [vmem:[#allocation6_spill] sm:$0xff] %v2786_v4  ;;  %v2791_v5 = vld [vmem:[%s3317_s2 + $0x90] sm:$0xff]  ;;  %v2798_v6 = vld [vmem:[%s3317_s2 + $0x98] sm:$0xff] }
 0x16d   :  { %v536_v9 = vadd.f32 1.0, %v1694_v7  ;;  %3373 = vst [vmem:[#allocation7_spill] sm:$0xff] %v2791_v5  ;;  %863 = vmatpush.msra.mxu2 %v2791_v5  ;;  %883 = vmatpush.msra.mxu3 %v2798_v6  ;;  %v2805_v7 = vld [vmem:[%s3317_s2 + $0x60] sm:$0xff] }
 0x16e   :  { %v533_v10 = vmul.f32 0.5, %v532_v8  ;;  %3374 = vst [vmem:[#allocation8_spill] sm:$0xff] %v2798_v6  ;;  %v2810_v8 = vld [vmem:[%s3317_s2 + $0x68] sm:$0xff]  ;;  %824 = vmatpush.msra.mxu0 %v2805_v7 }
 0x16f   :  { %v537_v11 = vmul.f32 0.5, %v536_v9  ;;  %3375 = vst [vmem:[#allocation9_spill] sm:$0xff] %v2805_v7  ;;  %v2815_v9 = vld [vmem:[%s3317_s2 + $0x70] sm:$0xff]  ;;  %844 = vmatpush.msra.mxu1 %v2810_v8 }
 0x170   :  { %v1696_v13 = vpop.eup %1695  ;;  %3376 = vst [vmem:[#allocation10_spill] sm:$0xff] %v2810_v8  ;;  %864 = vmatpush.msra.mxu2 %v2815_v9 }
 0x171   :  { %v546_v14 = vmul.f32 %v544_v12, %v537_v11  ;;  %v547_v15 = vmul.f32 %v1696_v13, %v533_v10  ;;  %3377 = vst [vmem:[#allocation11_spill] sm:$0xff] %v2815_v9  ;;  %v2822_v10 = vld [vmem:[%s3317_s2 + $0x78] sm:$0xff]  ;;  %v2829_v11 = vld [vmem:[%s3317_s2 + $0x40] sm:$0xff]  ;;  %v2834_v12 = vld [vmem:[%s3317_s2 + $0x48] sm:$0xff] }
 0x172   :  { %v1698_v16 = vpop.eup %1697  ;;  %3378 = vst [vmem:[#allocation12_spill] sm:$0xff] %v2822_v10  ;;  %884 = vmatpush.msra.mxu3 %v2822_v10  ;;  %v2839_v13 = vld [vmem:[%s3317_s2 + $0x50] sm:$0xff]  ;;  %825 = vmatpush.msra.mxu0 %v2829_v11 }
 0x173   :  { %v2508_v17 = vadd.f32 %v547_v15, %v546_v14  ;;  %v541_v18 = vadd.f32 1.0, %v1698_v16  ;;  %3379 = vst [vmem:[#allocation13_spill] sm:$0xff] %v2829_v11  ;;  %845 = vmatpush.msra.mxu1 %v2834_v12  ;;  %v2846_v14 = vld [vmem:[%s3317_s2 + $0x58] sm:$0xff]  ;;  %865 = vmatpush.msra.mxu2 %v2839_v13  ;;  %v2853_v15 = vld [vmem:[%s3317_s2 + $0x20] sm:$0xff]  ;;  %v2858_v16 = vld [vmem:[%s3317_s2 + $0x28] sm:$0xff] }
 0x174   :  { %3380 = vst [vmem:[#allocation14_spill] sm:$0xff] %v2834_v12  ;;  %885 = vmatpush.msra.mxu3 %v2846_v14  ;;  %826 = vmatpush.msra.mxu0 %v2853_v15  ;;  %v553_v12 = vld [vmem:[#allocation2] sm:$0x30] }
 0x175   :  { %1699 = vtanh.f32 %v2508_v17  ;;  %v542_v19 = vmul.f32 0.5, %v541_v18  ;;  %3381 = vst [vmem:[#allocation15_spill] sm:$0xff] %v2839_v13  ;;  %v2863_v18 = vld [vmem:[%s3317_s2 + $0x30] sm:$0xff]  ;;  %846 = vmatpush.msra.mxu1 %v2858_v16 }
 0x176   :  { %3382 = vst [vmem:[#allocation16_spill] sm:$0xff] %v2846_v14  ;;  %866 = vmatpush.msra.mxu2 %v2863_v18 }
 0x177   :  { %3383 = vst [vmem:[#allocation17_spill] sm:$0xff] %v2853_v15  ;;  %v2887_v15 = vld [vmem:[%s3317_s2 + $0x10] sm:$0xff] }
 0x178   :  { %3384 = vst [vmem:[#allocation18_spill] sm:$0xff] %v2858_v16  ;;  %v2882_v16 = vld [vmem:[%s3317_s2 + $0x8] sm:$0xff]  ;;  %867 = vmatpush.msra.mxu2 %v2887_v15 }
 0x179   :  { %3385 = vst [vmem:[#allocation19_spill] sm:$0xff] %v2863_v18  ;;  %847 = vmatpush.msra.mxu1 %v2882_v16  ;;  %v552_v18 = vld [vmem:[#allocation2 + $0x30] sm:$0x30] }
 0x17a   :  { %3388 = vst [vmem:[#allocation22_spill] sm:$0xff] %v2882_v16 }
 0x17b   :  { %v1700_v20 = vpop.eup %1699  ;;  %3389 = vst [vmem:[#allocation23_spill] sm:$0xff] %v2887_v15 }
 0x17c   :  { %v550_v21 = vmul.f32 %v1700_v20, %v542_v19  ;;  %v2870_v19 = vld [vmem:[%s3317_s2 + $0x38] sm:$0xff] }
 0x17d   :  { %3386 = vst [vmem:[#allocation20_spill] sm:$0xff] %v2870_v19  ;;  %886 = vmatpush.msra.mxu3 %v2870_v19  ;;  %v2894_v19 = vld [vmem:[%s3317_s2 + $0x18] sm:$0xff] }
 0x17e   :  { %551 = vst [vmem:[%s3320_s4] sm:$0xc] %v550_v21  ;;  %v621_v22 = vrot.slane %v550_v21, 2 }
 0x17f   :  { %3390 = vst [vmem:[#allocation24_spill] sm:$0xff] %v2894_v19  ;;  %887 = vmatpush.msra.mxu3 %v2894_v19 }
 0x180   :  { %639 = vmatmul.f32.vlgmr.msrb.gmra.mxu0 %v621_v22  ;;  %659 = vmatmul.f32.vlgmr.msrb.gmra.mxu1 %v621_v22 }
 0x181   :  { %679 = vmatmul.f32.vlgmr.msrb.gmra.mxu2 %v621_v22  ;;  %699 = vmatmul.f32.vlgmr.msrb.gmra.mxu3 %v621_v22  ;;  %v2877_v22 = vld [vmem:[%s3317_s2] sm:$0xff] }
 0x182   :  { %3387 = vst [vmem:[#allocation21_spill] sm:$0xff] %v2877_v22  ;;  %827 = vmatpush.msra.mxu0 %v2877_v22  ;;  %1021 = vmatpush.msrb.mxu1 %v2522_v24 }
 0x183   :  { %1041 = vmatpush.msrb.mxu2 %v2527_v25  ;;  %1061 = vmatpush.msrb.mxu3 %v2534_v26 }
 0x184   :  { %1001 = vmatpush.msrb.mxu0 %v2517_v23  ;;  %1022 = vmatpush.msrb.mxu1 %v2546_v28 }
 0x185   :  { %1042 = vmatpush.msrb.mxu2 %v2551_v29  ;;  %1062 = vmatpush.msrb.mxu3 %v2558_v30 }
 0x186   :  { %1002 = vmatpush.msrb.mxu0 %v2541_v27  ;;  %1023 = vmatpush.msrb.mxu1 %v2570_v33 }
 0x187   :  { %1043 = vmatpush.msrb.mxu2 %v2575_v34  ;;  %1063 = vmatpush.msrb.mxu3 %v2582_v35 }
 0x188   :  { %1003 = vmatpush.msrb.mxu0 %v2565_v31  ;;  %1024 = vmatpush.msrb.mxu1 %v2594_v37 }
 0x189   :  { %1044 = vmatpush.msrb.mxu2 %v2599_v38  ;;  %1064 = vmatpush.msrb.mxu3 %v2606_v39 }
 0x18a   :  { %1004 = vmatpush.msrb.mxu0 %v2589_v36  ;;  %1025 = vmatpush.msrb.mxu1 %v2618_v41 }
 0x18b   :  { %1045 = vmatpush.msrb.mxu2 %v2623_v42  ;;  %1065 = vmatpush.msrb.mxu3 %v2630_v43 }
 0x18c   :  { %1005 = vmatpush.msrb.mxu0 %v2613_v40  ;;  %1026 = vmatpush.msrb.mxu1 %v2642_v45 }
 0x18d   :  { %1046 = vmatpush.msrb.mxu2 %v2647_v46  ;;  %1066 = vmatpush.msrb.mxu3 %v2654_v47 }
 0x18e   :  { %1006 = vmatpush.msrb.mxu0 %v2637_v44  ;;  %1027 = vmatpush.msrb.mxu1 %v2666_v50 }
 0x18f   :  { %1047 = vmatpush.msrb.mxu2 %v2671_v51  ;;  %1067 = vmatpush.msrb.mxu3 %v2678_v52 }
 0x190   :  { %1007 = vmatpush.msrb.mxu0 %v2661_v48  ;;  %1028 = vmatpush.msrb.mxu1 %v2690_v54 }
 0x191   :  { %1048 = vmatpush.msrb.mxu2 %v2695_v55  ;;  %1068 = vmatpush.msrb.mxu3 %v2702_v56 }
 0x192   :  { %1008 = vmatpush.msrb.mxu0 %v2685_v53  ;;  %1029 = vmatpush.msrb.mxu1 %v2714_v58 }
 0x193   :  { %1049 = vmatpush.msrb.mxu2 %v2719_v60  ;;  %1069 = vmatpush.msrb.mxu3 %v2726_v61 }
 0x194   :  { %1009 = vmatpush.msrb.mxu0 %v2709_v57  ;;  %1030 = vmatpush.msrb.mxu1 %v2738_v63 }
 0x195   :  { %1050 = vmatpush.msrb.mxu2 %v2743_v32  ;;  %1070 = vmatpush.msrb.mxu3 %v2750_v49 }
 0x196   :  { %1010 = vmatpush.msrb.mxu0 %v2733_v62  ;;  %1031 = vmatpush.msrb.mxu1 %v2762_v0 }
 0x197   :  { %1051 = vmatpush.msrb.mxu2 %v2767_v1  ;;  %1071 = vmatpush.msrb.mxu3 %v2774_v2 }
 0x198   :  { %1011 = vmatpush.msrb.mxu0 %v2757_v59  ;;  %1032 = vmatpush.msrb.mxu1 %v2786_v4 }
 0x199   :  { %1052 = vmatpush.msrb.mxu2 %v2791_v5  ;;  %1072 = vmatpush.msrb.mxu3 %v2798_v6 }
 0x19a   :  { %1012 = vmatpush.msrb.mxu0 %v2781_v3  ;;  %1033 = vmatpush.msrb.mxu1 %v2810_v8 }
 0x19b   :  { %1053 = vmatpush.msrb.mxu2 %v2815_v9  ;;  %v3400_v9 = vld [vmem:[#allocation20_spill] sm:$0xff] }
 0x19c   :  { %1013 = vmatpush.msrb.mxu0 %v2805_v7  ;;  %v3398_v7 = vld [vmem:[#allocation18_spill] sm:$0xff] }
 0x1fd   :  { %v640_v20 = vpop.f32.mrf.mxu0  ;;  %v660_v21 = vpop.f32.mrf.mxu1 }
 0x1fe   :  { %v707_v14 = vrot.slane %v640_v20, 4  ;;  %v708_v13 = vrot.slane %v660_v21, 4 }
 0x200   :  { %v715_v11 = vadd.f32 %v707_v14, %v552_v18  ;;  %v716_v10 = vadd.f32 %v708_v13, %v553_v12 }
 0x202   :  { %v719_v20 = vmul.f32 0.5, %v715_v11  ;;  %v723_v21 = vmul.f32 0.5, %v716_v10  ;;  %v554_v10 = vld [vmem:[#allocation2 + $0x18] sm:$0x30]  ;;  %v555_v11 = vld [vmem:[#allocation2 + $0x10] sm:$0x30] }
 0x204   :  { %1701 = vtanh.f32 %v719_v20  ;;  %v680_v12 = vpop.f32.mrf.mxu2  ;;  %v700_v13 = vpop.f32.mrf.mxu3 }
 0x205   :  { %1703 = vtanh.f32 %v723_v21  ;;  %v709_v14 = vrot.slane %v680_v12, 4  ;;  %v710_v18 = vrot.slane %v700_v13, 4 }
 0x207   :  { %v717_v20 = vadd.f32 %v709_v14, %v554_v10  ;;  %v718_v30 = vadd.f32 %v710_v18, %v555_v11  ;;  %v733_v11 = vrot.slane %v2508_v17, 6 }
 0x209   :  { %1705 = vtanh.f32 %v717_v20  ;;  %v728_v21 = vmul.f32 0.5, %v718_v30 }
 0x20a   :  { %v1702_v12 = vpop.eup %1701 }
 0x20b   :  { %v1704_v13 = vpop.eup %1703  ;;  %v721_v14 = vadd.f32 1.0, %v1702_v12  ;;  %1707 = vtanh.f32 %v728_v21 }
 0x20c   :  { %v725_v18 = vadd.f32 1.0, %v1704_v13 }
 0x20d   :  { %v722_v30 = vmul.f32 0.5, %v721_v14 }
 0x20e   :  { %v726_v10 = vmul.f32 0.5, %v725_v18 }
 0x20f   :  { %v1706_v20 = vpop.eup %1705 }
 0x210   :  { %v735_v21 = vmul.f32 %v733_v11, %v726_v10  ;;  %v736_v12 = vmul.f32 %v1706_v20, %v722_v30  ;;  %v3392_v30 = vld [vmem:[#allocation12_spill] sm:$0xff]  ;;  %v3393_v11 = vld [vmem:[#allocation13_spill] sm:$0xff]  ;;  %v3394_v20 = vld [vmem:[#allocation14_spill] sm:$0xff] }
 0x211   :  { %v1708_v17 = vpop.eup %1707  ;;  %1073 = vmatpush.msrb.mxu3 %v3392_v30  ;;  %1014 = vmatpush.msrb.mxu0 %v3393_v11  ;;  %v3399_v30 = vld [vmem:[#allocation19_spill] sm:$0xff] }
 0x212   :  { %v2935_v13 = vadd.f32 %v736_v12, %v735_v21  ;;  %v730_v14 = vadd.f32 1.0, %v1708_v17  ;;  %1034 = vmatpush.msrb.mxu1 %v3394_v20  ;;  %v3395_v12 = vld [vmem:[#allocation15_spill] sm:$0xff]  ;;  %v3396_v17 = vld [vmem:[#allocation16_spill] sm:$0xff] }
 0x213   :  { %1054 = vmatpush.msrb.mxu2 %v3395_v12  ;;  %1074 = vmatpush.msrb.mxu3 %v3396_v17 }
 0x214   :  { %3391 = vst [vmem:[#allocation25_spill] sm:$0xff] %v2935_v13  ;;  %1709 = vtanh.f32 %v2935_v13  ;;  %v731_v18 = vmul.f32 0.5, %v730_v14  ;;  %v3397_v13 = vld [vmem:[#allocation17_spill] sm:$0xff]  ;;  %1035 = vmatpush.msrb.mxu1 %v3398_v7 }
 0x215   :  { %1015 = vmatpush.msrb.mxu0 %v3397_v13  ;;  %1055 = vmatpush.msrb.mxu2 %v3399_v30 }
 0x216   :  { %1075 = vmatpush.msrb.mxu3 %v3400_v9  ;;  %1036 = vmatpush.msrb.mxu1 %v2882_v16 }
 0x217   :  { %1016 = vmatpush.msrb.mxu0 %v2877_v22  ;;  %1056 = vmatpush.msrb.mxu2 %v2887_v15 }
 0x218   :  { %1076 = vmatpush.msrb.mxu3 %v2894_v19 }
 0x21a   :  { %v1710_v10 = vpop.eup %1709 }
 0x21b   :  { %v739_v21 = vmul.f32 %v1710_v10, %v731_v18  ;;  %v3401_v18 = vld [vmem:[#allocation3_spill] sm:$0xff]  ;;  %v3402_v10 = vld [vmem:[#allocation9_spill] sm:$0xff] }
 0x21d   :  { %740 = vst [vmem:[%s3320_s4] sm:$0x30] %v739_v21  ;;  %v810_v14 = vrot.slane %v739_v21, 4  ;;  %v3403_v21 = vld [vmem:[#allocation11_spill] sm:$0xff] }
 0x21f   :  { %828 = vmatmul.f32.vlgmr.msra.gmra.mxu0 %v810_v14  ;;  %848 = vmatmul.f32.vlgmr.msra.gmra.mxu1 %v810_v14 }
 0x220   :  { %868 = vmatmul.f32.vlgmr.msra.gmra.mxu2 %v810_v14  ;;  %888 = vmatmul.f32.vlgmr.msra.gmra.mxu3 %v810_v14  ;;  %v3404_v14 = vld [vmem:[#allocation12_spill] sm:$0xff] }
 0x221   :  { %1175 = vmatpush.msra.mxu0 %v2517_v23  ;;  %1195 = vmatpush.msra.mxu1 %v2522_v24 }
 0x222   :  { %1215 = vmatpush.msra.mxu2 %v2527_v25  ;;  %1235 = vmatpush.msra.mxu3 %v2534_v26 }
 0x223   :  { %1176 = vmatpush.msra.mxu0 %v2541_v27  ;;  %1196 = vmatpush.msra.mxu1 %v2546_v28 }
 0x224   :  { %1216 = vmatpush.msra.mxu2 %v2551_v29  ;;  %1236 = vmatpush.msra.mxu3 %v3401_v18 }
 0x225   :  { %1177 = vmatpush.msra.mxu0 %v2565_v31  ;;  %1197 = vmatpush.msra.mxu1 %v2570_v33 }
 0x226   :  { %1217 = vmatpush.msra.mxu2 %v2575_v34  ;;  %1237 = vmatpush.msra.mxu3 %v2582_v35 }
 0x227   :  { %1178 = vmatpush.msra.mxu0 %v2589_v36  ;;  %1198 = vmatpush.msra.mxu1 %v2594_v37 }
 0x228   :  { %1218 = vmatpush.msra.mxu2 %v2599_v38  ;;  %1238 = vmatpush.msra.mxu3 %v2606_v39 }
 0x229   :  { %1179 = vmatpush.msra.mxu0 %v2613_v40  ;;  %1199 = vmatpush.msra.mxu1 %v2618_v41 }
 0x22a   :  { %1219 = vmatpush.msra.mxu2 %v2623_v42  ;;  %1239 = vmatpush.msra.mxu3 %v2630_v43 }
 0x22b   :  { %1180 = vmatpush.msra.mxu0 %v2637_v44  ;;  %1200 = vmatpush.msra.mxu1 %v2642_v45 }
 0x22c   :  { %1220 = vmatpush.msra.mxu2 %v2647_v46  ;;  %1240 = vmatpush.msra.mxu3 %v2654_v47 }
 0x22d   :  { %1181 = vmatpush.msra.mxu0 %v2661_v48  ;;  %1201 = vmatpush.msra.mxu1 %v2666_v50 }
 0x22e   :  { %1221 = vmatpush.msra.mxu2 %v2671_v51  ;;  %1241 = vmatpush.msra.mxu3 %v2678_v52 }
 0x22f   :  { %1182 = vmatpush.msra.mxu0 %v2685_v53  ;;  %1202 = vmatpush.msra.mxu1 %v2690_v54 }
 0x230   :  { %1222 = vmatpush.msra.mxu2 %v2695_v55  ;;  %1242 = vmatpush.msra.mxu3 %v2702_v56 }
 0x231   :  { %1183 = vmatpush.msra.mxu0 %v2709_v57  ;;  %1203 = vmatpush.msra.mxu1 %v2714_v58 }
 0x232   :  { %1223 = vmatpush.msra.mxu2 %v2719_v60  ;;  %1243 = vmatpush.msra.mxu3 %v2726_v61 }
 0x233   :  { %1184 = vmatpush.msra.mxu0 %v2733_v62  ;;  %1204 = vmatpush.msra.mxu1 %v2738_v63 }
 0x234   :  { %1224 = vmatpush.msra.mxu2 %v2743_v32  ;;  %1244 = vmatpush.msra.mxu3 %v2750_v49 }
 0x235   :  { %1185 = vmatpush.msra.mxu0 %v2757_v59  ;;  %1205 = vmatpush.msra.mxu1 %v2762_v0 }
 0x236   :  { %1225 = vmatpush.msra.mxu2 %v2767_v1  ;;  %1245 = vmatpush.msra.mxu3 %v2774_v2 }
 0x237   :  { %1186 = vmatpush.msra.mxu0 %v2781_v3  ;;  %1206 = vmatpush.msra.mxu1 %v2786_v4 }
 0x238   :  { %1226 = vmatpush.msra.mxu2 %v2791_v5  ;;  %1246 = vmatpush.msra.mxu3 %v2798_v6  ;;  %v743_v6 = vld [vmem:[#allocation2 + $0x18] sm:$0xc0] }
 0x239   :  { %1187 = vmatpush.msra.mxu0 %v3402_v10  ;;  %1207 = vmatpush.msra.mxu1 %v2810_v8 }
 0x23a   :  { %1227 = vmatpush.msra.mxu2 %v3403_v21  ;;  %1247 = vmatpush.msra.mxu3 %v3404_v14  ;;  %v741_v14 = vld [vmem:[#allocation2 + $0x30] sm:$0xc0] }
 0x23b   :  { %1188 = vmatpush.msra.mxu0 %v3393_v11  ;;  %1208 = vmatpush.msra.mxu1 %v3394_v20 }
 0x23c   :  { %1228 = vmatpush.msra.mxu2 %v3395_v12  ;;  %1248 = vmatpush.msra.mxu3 %v3396_v17 }
 0x23d   :  { %1189 = vmatpush.msra.mxu0 %v3397_v13  ;;  %1209 = vmatpush.msra.mxu1 %v3398_v7  ;;  %v742_v13 = vld [vmem:[#allocation2] sm:$0xc0] }
 0x23e   :  { %1229 = vmatpush.msra.mxu2 %v3399_v30  ;;  %1249 = vmatpush.msra.mxu3 %v3400_v9 }
 0x23f   :  { %1190 = vmatpush.msra.mxu0 %v2877_v22  ;;  %1210 = vmatpush.msra.mxu1 %v2882_v16 }
 0x240   :  { %1230 = vmatpush.msra.mxu2 %v2887_v15  ;;  %1250 = vmatpush.msra.mxu3 %v2894_v19  ;;  %v744_v15 = vld [vmem:[#allocation2 + $0x10] sm:$0xc0] }
 0x29c   :  { %v829_v20 = vpop.f32.mrf.mxu0  ;;  %v849_v12 = vpop.f32.mrf.mxu1 }
 0x29d   :  { %v896_v11 = vrot.slane %v829_v20, 2  ;;  %v897_v17 = vrot.slane %v849_v12, 2 }
 0x29f   :  { %v904_v21 = vadd.f32 %v896_v11, %v741_v14  ;;  %v905_v7 = vadd.f32 %v897_v17, %v742_v13 }
 0x2a1   :  { %v908_v8 = vmul.f32 0.5, %v904_v21  ;;  %v912_v30 = vmul.f32 0.5, %v905_v7  ;;  %v3405_v7 = vld [vmem:[#allocation25_spill] sm:$0xff] }
 0x2a3   :  { %1711 = vtanh.f32 %v908_v8  ;;  %v869_v9 = vpop.f32.mrf.mxu2  ;;  %v889_v10 = vpop.f32.mrf.mxu3  ;;  %v922_v8 = vrot.slane %v3405_v7, 6 }
 0x2a4   :  { %1713 = vtanh.f32 %v912_v30  ;;  %v898_v22 = vrot.slane %v869_v9, 2  ;;  %v899_v16 = vrot.slane %v889_v10, 2 }
 0x2a6   :  { %v906_v5 = vadd.f32 %v898_v22, %v743_v6  ;;  %v907_v19 = vadd.f32 %v899_v16, %v744_v15 }
 0x2a8   :  { %1715 = vtanh.f32 %v906_v5  ;;  %v917_v4 = vmul.f32 0.5, %v907_v19 }
 0x2a9   :  { %v1712_v20 = vpop.eup %1711 }
 0x2aa   :  { %v1714_v12 = vpop.eup %1713  ;;  %v910_v3 = vadd.f32 1.0, %v1712_v20  ;;  %1717 = vtanh.f32 %v917_v4 }
 0x2ab   :  { %v914_v2 = vadd.f32 1.0, %v1714_v12 }
 0x2ac   :  { %v911_v13 = vmul.f32 0.5, %v910_v3 }
 0x2ad   :  { %v915_v11 = vmul.f32 0.5, %v914_v2 }
 0x2ae   :  { %v1716_v17 = vpop.eup %1715 }
 0x2af   :  { %v924_v21 = vmul.f32 %v922_v8, %v915_v11  ;;  %v925_v30 = vmul.f32 %v1716_v17, %v911_v13 }
 0x2b0   :  { %v1718_v9 = vpop.eup %1717 }
 0x2b1   :  { %v3034_v10 = vadd.f32 %v925_v30, %v924_v21  ;;  %v919_v6 = vadd.f32 1.0, %v1718_v9  ;;  %v1107_v30 = vld [vmem:[#allocation2 + $0x8] sm:$0xc]  ;;  %v1108_v9 = vld [vmem:[#allocation2 + $0x20] sm:$0xc] }
 0x2b3   :  { %1719 = vtanh.f32 %v3034_v10  ;;  %v920_v5 = vmul.f32 0.5, %v919_v6  ;;  %v1099_v2 = vrot.slane %v3034_v10, 6 }
 0x2b9   :  { %v1720_v15 = vpop.eup %1719 }
 0x2ba   :  { %v928_v16 = vmul.f32 %v1720_v15, %v920_v5 }
 0x2bc   :  { %929 = vst [vmem:[%s3320_s4] sm:$0xc0] %v928_v16  ;;  %v999_v3 = vrot.slane %v928_v16, 6 }
 0x2be   :  { %1017 = vmatmul.f32.vlgmr.msrb.gmra.mxu0 %v999_v3  ;;  %1037 = vmatmul.f32.vlgmr.msrb.gmra.mxu1 %v999_v3 }
 0x2bf   :  { %1057 = vmatmul.f32.vlgmr.msrb.gmra.mxu2 %v999_v3  ;;  %1077 = vmatmul.f32.vlgmr.msrb.gmra.mxu3 %v999_v3 }
 0x2c0   :  { %1364 = vmatpush.msrb.mxu0 %v2517_v23  ;;  %1384 = vmatpush.msrb.mxu1 %v2522_v24  ;;  %v3406_v23 = vld [vmem:[#allocation4_spill] sm:$0xff]  ;;  %v3407_v24 = vld [vmem:[#allocation5_spill] sm:$0xff] }
 0x2c1   :  { %1404 = vmatpush.msrb.mxu2 %v2527_v25  ;;  %1424 = vmatpush.msrb.mxu3 %v2534_v26  ;;  %v3408_v25 = vld [vmem:[#allocation6_spill] sm:$0xff]  ;;  %v3409_v26 = vld [vmem:[#allocation7_spill] sm:$0xff] }
 0x2c2   :  { %1365 = vmatpush.msrb.mxu0 %v2541_v27  ;;  %1385 = vmatpush.msrb.mxu1 %v2546_v28  ;;  %v3410_v27 = vld [vmem:[#allocation8_spill] sm:$0xff]  ;;  %v3411_v28 = vld [vmem:[#allocation9_spill] sm:$0xff] }
 0x2c3   :  { %1405 = vmatpush.msrb.mxu2 %v2551_v29  ;;  %1425 = vmatpush.msrb.mxu3 %v3401_v18  ;;  %v3412_v29 = vld [vmem:[#allocation10_spill] sm:$0xff] }
 0x2c4   :  { %1366 = vmatpush.msrb.mxu0 %v2565_v31  ;;  %1386 = vmatpush.msrb.mxu1 %v2570_v33  ;;  %v3413_v31 = vld [vmem:[#allocation11_spill] sm:$0xff]  ;;  %v3414_v33 = vld [vmem:[#allocation12_spill] sm:$0xff] }
 0x2c5   :  { %1406 = vmatpush.msrb.mxu2 %v2575_v34  ;;  %1426 = vmatpush.msrb.mxu3 %v2582_v35  ;;  %v3415_v34 = vld [vmem:[#allocation13_spill] sm:$0xff]  ;;  %v3416_v35 = vld [vmem:[#allocation14_spill] sm:$0xff] }
 0x2c6   :  { %1367 = vmatpush.msrb.mxu0 %v2589_v36  ;;  %1387 = vmatpush.msrb.mxu1 %v2594_v37  ;;  %v3417_v36 = vld [vmem:[#allocation15_spill] sm:$0xff]  ;;  %v3418_v37 = vld [vmem:[#allocation16_spill] sm:$0xff] }
 0x2c7   :  { %1407 = vmatpush.msrb.mxu2 %v2599_v38  ;;  %1427 = vmatpush.msrb.mxu3 %v2606_v39  ;;  %v3419_v38 = vld [vmem:[#allocation17_spill] sm:$0xff]  ;;  %v3420_v39 = vld [vmem:[#allocation18_spill] sm:$0xff] }
 0x2c8   :  { %1368 = vmatpush.msrb.mxu0 %v2613_v40  ;;  %1388 = vmatpush.msrb.mxu1 %v2618_v41  ;;  %v3421_v40 = vld [vmem:[#allocation19_spill] sm:$0xff]  ;;  %v3422_v41 = vld [vmem:[#allocation20_spill] sm:$0xff] }
 0x2c9   :  { %1408 = vmatpush.msrb.mxu2 %v2623_v42  ;;  %1428 = vmatpush.msrb.mxu3 %v2630_v43  ;;  %v3423_v42 = vld [vmem:[#allocation21_spill] sm:$0xff]  ;;  %v3424_v43 = vld [vmem:[#allocation22_spill] sm:$0xff] }
 0x2ca   :  { %1369 = vmatpush.msrb.mxu0 %v2637_v44  ;;  %1389 = vmatpush.msrb.mxu1 %v2642_v45  ;;  %v3425_v44 = vld [vmem:[#allocation23_spill] sm:$0xff]  ;;  %v3426_v45 = vld [vmem:[#allocation24_spill] sm:$0xff] }
 0x2cb   :  { %1409 = vmatpush.msrb.mxu2 %v2647_v46  ;;  %1429 = vmatpush.msrb.mxu3 %v2654_v47  ;;  %v930_v46 = vld [vmem:[#allocation2 + $0x8] sm:$0x3] }
 0x2cc   :  { %1370 = vmatpush.msrb.mxu0 %v2661_v48  ;;  %1390 = vmatpush.msrb.mxu1 %v2666_v50  ;;  %v931_v48 = vld [vmem:[#allocation2 + $0x20] sm:$0x3] }
 0x2cd   :  { %1410 = vmatpush.msrb.mxu2 %v2671_v51  ;;  %1430 = vmatpush.msrb.mxu3 %v2678_v52 }
 0x2ce   :  { %1371 = vmatpush.msrb.mxu0 %v2685_v53  ;;  %1391 = vmatpush.msrb.mxu1 %v2690_v54 }
 0x2cf   :  { %1411 = vmatpush.msrb.mxu2 %v2695_v55  ;;  %1431 = vmatpush.msrb.mxu3 %v2702_v56  ;;  %v932_v55 = vld [vmem:[#allocation2 + $0x28] sm:$0x3] }
 0x2d0   :  { %1372 = vmatpush.msrb.mxu0 %v2709_v57  ;;  %1392 = vmatpush.msrb.mxu1 %v2714_v58  ;;  %v933_v57 = vld [vmem:[#allocation2 + $0x38] sm:$0x3] }
 0x2d1   :  { %1412 = vmatpush.msrb.mxu2 %v2719_v60  ;;  %1432 = vmatpush.msrb.mxu3 %v2726_v61 }
 0x2d2   :  { %1373 = vmatpush.msrb.mxu0 %v2733_v62  ;;  %1393 = vmatpush.msrb.mxu1 %v2738_v63 }
 0x2d3   :  { %1413 = vmatpush.msrb.mxu2 %v2743_v32  ;;  %1433 = vmatpush.msrb.mxu3 %v2750_v49 }
 0x2d4   :  { %1374 = vmatpush.msrb.mxu0 %v2757_v59  ;;  %1394 = vmatpush.msrb.mxu1 %v2762_v0 }
 0x2d5   :  { %1414 = vmatpush.msrb.mxu2 %v2767_v1  ;;  %1434 = vmatpush.msrb.mxu3 %v3406_v23 }
 0x2d6   :  { %1375 = vmatpush.msrb.mxu0 %v3407_v24  ;;  %1395 = vmatpush.msrb.mxu1 %v3408_v25  ;;  %v1109_v25 = vld [vmem:[#allocation2 + $0x28] sm:$0xc] }
 0x2d7   :  { %1415 = vmatpush.msrb.mxu2 %v3409_v26  ;;  %1435 = vmatpush.msrb.mxu3 %v3410_v27  ;;  %v1110_v26 = vld [vmem:[#allocation2 + $0x38] sm:$0xc] }
 0x2d8   :  { %1376 = vmatpush.msrb.mxu0 %v3411_v28  ;;  %1396 = vmatpush.msrb.mxu1 %v3412_v29 }
 0x2d9   :  { %1416 = vmatpush.msrb.mxu2 %v3413_v31  ;;  %1436 = vmatpush.msrb.mxu3 %v3414_v33 }
 0x2da   :  { %1377 = vmatpush.msrb.mxu0 %v3415_v34  ;;  %1397 = vmatpush.msrb.mxu1 %v3416_v35 }
 0x2db   :  { %1417 = vmatpush.msrb.mxu2 %v3417_v36  ;;  %1437 = vmatpush.msrb.mxu3 %v3418_v37 }
 0x2dc   :  { %1378 = vmatpush.msrb.mxu0 %v3419_v38  ;;  %1398 = vmatpush.msrb.mxu1 %v3420_v39 }
 0x2dd   :  { %1418 = vmatpush.msrb.mxu2 %v3421_v40  ;;  %1438 = vmatpush.msrb.mxu3 %v3422_v41 }
 0x2de   :  { %1379 = vmatpush.msrb.mxu0 %v3423_v42  ;;  %1399 = vmatpush.msrb.mxu1 %v3424_v43 }
 0x2df   :  { %1419 = vmatpush.msrb.mxu2 %v3425_v44  ;;  %1439 = vmatpush.msrb.mxu3 %v3426_v45 }
 0x33b   :  { %v1018_v47 = vpop.f32.mrf.mxu0  ;;  %v1038_v50 = vpop.f32.mrf.mxu1 }
 0x33c   :  { %v1081_v51 = vadd.f32 %v1018_v47, %v930_v46  ;;  %v1082_v52 = vadd.f32 %v1038_v50, %v931_v48  ;;  %v1546_v50 = vld [vmem:[%s3317_s2 + $0x1e0] sm:$0xff] }
 0x33e   :  { %v1085_v53 = vmul.f32 0.5, %v1081_v51  ;;  %v1089_v54 = vmul.f32 0.5, %v1082_v52  ;;  %v1547_v51 = vld [vmem:[%s3317_s2 + $0x1e8] sm:$0xff]  ;;  %v1548_v52 = vld [vmem:[%s3317_s2 + $0x1f0] sm:$0xff] }
 0x340   :  { %1721 = vtanh.f32 %v1085_v53  ;;  %v1549_v53 = vld [vmem:[%s3317_s2 + $0x1f8] sm:$0xff] }
 0x341   :  { %1723 = vtanh.f32 %v1089_v54  ;;  %v1542_v54 = vld [vmem:[%s3317_s2 + $0x1c0] sm:$0xff] }
 0x342   :  { %v1058_v56 = vpop.f32.mrf.mxu2  ;;  %v1078_v58 = vpop.f32.mrf.mxu3 }
 0x343   :  { %v1083_v60 = vadd.f32 %v1058_v56, %v932_v55  ;;  %v1084_v61 = vadd.f32 %v1078_v58, %v933_v57  ;;  %v1543_v55 = vld [vmem:[%s3317_s2 + $0x1c8] sm:$0xff]  ;;  %v1544_v56 = vld [vmem:[%s3317_s2 + $0x1d0] sm:$0xff]  ;;  %v1545_v57 = vld [vmem:[%s3317_s2 + $0x1d8] sm:$0xff] }
 0x344   :  { %v1538_v58 = vld [vmem:[%s3317_s2 + $0x1a0] sm:$0xff] }
 0x345   :  { %1725 = vtanh.f32 %v1083_v60  ;;  %v1094_v62 = vmul.f32 0.5, %v1084_v61  ;;  %v1539_v60 = vld [vmem:[%s3317_s2 + $0x1a8] sm:$0xff]  ;;  %v1540_v61 = vld [vmem:[%s3317_s2 + $0x1b0] sm:$0xff] }
 0x346   :  { %v1722_v63 = vpop.eup %1721 }
 0x347   :  { %v1724_v32 = vpop.eup %1723  ;;  %v1087_v49 = vadd.f32 1.0, %v1722_v63  ;;  %1727 = vtanh.f32 %v1094_v62  ;;  %v1541_v62 = vld [vmem:[%s3317_s2 + $0x1b8] sm:$0xff]  ;;  %v1534_v63 = vld [vmem:[%s3317_s2 + $0x180] sm:$0xff] }
 0x348   :  { %v1091_v59 = vadd.f32 1.0, %v1724_v32  ;;  %v1535_v32 = vld [vmem:[%s3317_s2 + $0x188] sm:$0xff] }
 0x349   :  { %v1088_v0 = vmul.f32 0.5, %v1087_v49  ;;  %v1536_v49 = vld [vmem:[%s3317_s2 + $0x190] sm:$0xff] }
 0x34a   :  { %v1092_v1 = vmul.f32 0.5, %v1091_v59  ;;  %v1537_v59 = vld [vmem:[%s3317_s2 + $0x198] sm:$0xff] }
 0x34b   :  { %v1726_v4 = vpop.eup %1725 }
 0x34c   :  { %v1101_v19 = vmul.f32 %v1099_v2, %v1092_v1  ;;  %v1102_v22 = vmul.f32 %v1726_v4, %v1088_v0  ;;  %v1530_v0 = vld [vmem:[%s3317_s2 + $0x160] sm:$0xff]  ;;  %v1531_v1 = vld [vmem:[%s3317_s2 + $0x168] sm:$0xff]  ;;  %v1532_v2 = vld [vmem:[%s3317_s2 + $0x170] sm:$0xff] }
 0x34d   :  { %v1728_v18 = vpop.eup %1727  ;;  %v1533_v4 = vld [vmem:[%s3317_s2 + $0x178] sm:$0xff] }
 0x34e   :  { %v1103_v14 = vadd.f32 %v1102_v22, %v1101_v19  ;;  %v1096_v20 = vadd.f32 1.0, %v1728_v18  ;;  %v1526_v19 = vld [vmem:[%s3317_s2 + $0x140] sm:$0xff]  ;;  %v1527_v22 = vld [vmem:[%s3317_s2 + $0x148] sm:$0xff]  ;;  %v1528_v18 = vld [vmem:[%s3317_s2 + $0x150] sm:$0xff] }
 0x350   :  { %1729 = vtanh.f32 %v1103_v14  ;;  %v1097_v12 = vmul.f32 0.5, %v1096_v20  ;;  %v1285_v38 = vrot.slane %v1103_v14, 6  ;;  %v1529_v14 = vld [vmem:[%s3317_s2 + $0x158] sm:$0xff]  ;;  %v1522_v20 = vld [vmem:[%s3317_s2 + $0x120] sm:$0xff] }
 0x356   :  { %v1730_v13 = vpop.eup %1729 }
 0x357   :  { %v1105_v11 = vmul.f32 %v1730_v13, %v1097_v12  ;;  %v1523_v12 = vld [vmem:[%s3317_s2 + $0x128] sm:$0xff]  ;;  %v1524_v13 = vld [vmem:[%s3317_s2 + $0x130] sm:$0xff] }
 0x359   :  { %1106 = vst [vmem:[%s3320_s4 + $0x8] sm:$0x3] %v1105_v11  ;;  %1191 = vmatmul.f32.vlgmr.msra.gmra.mxu0 %v1105_v11  ;;  %1211 = vmatmul.f32.vlgmr.msra.gmra.mxu1 %v1105_v11 }
 0x35a   :  { %1231 = vmatmul.f32.vlgmr.msra.gmra.mxu2 %v1105_v11  ;;  %1251 = vmatmul.f32.vlgmr.msra.gmra.mxu3 %v1105_v11  ;;  %v1525_v11 = vld [vmem:[%s3317_s2 + $0x138] sm:$0xff] }
 0x35b   :  { %1553 = vmatpush.msra.mxu0 %v1546_v50  ;;  %1573 = vmatpush.msra.mxu1 %v1547_v51  ;;  %v1487_v50 = vld [vmem:[%s3317_s2 + $0x8] sm:$0xff]  ;;  %v1488_v51 = vld [vmem:[%s3317_s2 + $0x10] sm:$0xff] }
 0x35c   :  { %1593 = vmatpush.msra.mxu2 %v1548_v52  ;;  %1613 = vmatpush.msra.mxu3 %v1549_v53 }
 0x35d   :  { %1554 = vmatpush.msra.mxu0 %v1542_v54  ;;  %1574 = vmatpush.msra.mxu1 %v1543_v55  ;;  %v1489_v54 = vld [vmem:[%s3317_s2 + $0x18] sm:$0xff]  ;;  %v1293_v55 = vld [vmem:[#allocation2 + $0x8] sm:$0x30] }
 0x35e   :  { %1594 = vmatpush.msra.mxu2 %v1544_v56  ;;  %1614 = vmatpush.msra.mxu3 %v1545_v57  ;;  %v1294_v56 = vld [vmem:[#allocation2 + $0x20] sm:$0x30] }
 0x35f   :  { %1555 = vmatpush.msra.mxu0 %v1538_v58  ;;  %1575 = vmatpush.msra.mxu1 %v1539_v60 }
 0x360   :  { %1595 = vmatpush.msra.mxu2 %v1540_v61  ;;  %1615 = vmatpush.msra.mxu3 %v1541_v62 }
 0x361   :  { %1556 = vmatpush.msra.mxu0 %v1534_v63  ;;  %1576 = vmatpush.msra.mxu1 %v1535_v32 }
 0x362   :  { %1596 = vmatpush.msra.mxu2 %v1536_v49  ;;  %1616 = vmatpush.msra.mxu3 %v1537_v59  ;;  %v1295_v59 = vld [vmem:[#allocation2 + $0x28] sm:$0x30] }
 0x363   :  { %1557 = vmatpush.msra.mxu0 %v1530_v0  ;;  %1577 = vmatpush.msra.mxu1 %v1531_v1  ;;  %v1296_v0 = vld [vmem:[#allocation2 + $0x38] sm:$0x30] }
 0x364   :  { %1597 = vmatpush.msra.mxu2 %v1532_v2  ;;  %1617 = vmatpush.msra.mxu3 %v1533_v4 }
 0x365   :  { %1558 = vmatpush.msra.mxu0 %v1526_v19  ;;  %1578 = vmatpush.msra.mxu1 %v1527_v22 }
 0x366   :  { %1598 = vmatpush.msra.mxu2 %v1528_v18  ;;  %1618 = vmatpush.msra.mxu3 %v1529_v14 }
 0x367   :  { %1559 = vmatpush.msra.mxu0 %v1522_v20  ;;  %1579 = vmatpush.msra.mxu1 %v1523_v12 }
 0x368   :  { %1599 = vmatpush.msra.mxu2 %v1524_v13  ;;  %1619 = vmatpush.msra.mxu3 %v1525_v11 }
 0x3d6   :  { %v1192_v7 = vpop.f32.mrf.mxu0  ;;  %v1212_v8 = vpop.f32.mrf.mxu1 }
 0x3d7   :  { %v1259_v17 = vrot.slane %v1192_v7, 6  ;;  %v1260_v21 = vrot.slane %v1212_v8, 6  ;;  %v1518_v7 = vld [vmem:[%s3317_s2 + $0x100] sm:$0xff]  ;;  %v1519_v8 = vld [vmem:[%s3317_s2 + $0x108] sm:$0xff] }
 0x3d8   :  { %1560 = vmatpush.msra.mxu0 %v1518_v7  ;;  %1580 = vmatpush.msra.mxu1 %v1519_v8 }
 0x3d9   :  { %v1267_v10 = vadd.f32 %v1259_v17, %v1107_v30  ;;  %v1268_v6 = vadd.f32 %v1260_v21, %v1108_v9  ;;  %v1520_v17 = vld [vmem:[%s3317_s2 + $0x110] sm:$0xff]  ;;  %v1521_v21 = vld [vmem:[%s3317_s2 + $0x118] sm:$0xff]  ;;  %v1514_v30 = vld [vmem:[%s3317_s2 + $0xe0] sm:$0xff] }
 0x3da   :  { %1600 = vmatpush.msra.mxu2 %v1520_v17  ;;  %1620 = vmatpush.msra.mxu3 %v1521_v21  ;;  %v1515_v9 = vld [vmem:[%s3317_s2 + $0xe8] sm:$0xff] }
 0x3db   :  { %v1271_v5 = vmul.f32 0.5, %v1267_v10  ;;  %v1275_v15 = vmul.f32 0.5, %v1268_v6  ;;  %v1516_v10 = vld [vmem:[%s3317_s2 + $0xf0] sm:$0xff]  ;;  %1561 = vmatpush.msra.mxu0 %v1514_v30  ;;  %1581 = vmatpush.msra.mxu1 %v1515_v9  ;;  %v1517_v6 = vld [vmem:[%s3317_s2 + $0xf8] sm:$0xff] }
 0x3dc   :  { %1601 = vmatpush.msra.mxu2 %v1516_v10  ;;  %1621 = vmatpush.msra.mxu3 %v1517_v6 }
 0x3dd   :  { %1731 = vtanh.f32 %v1271_v5  ;;  %v1232_v16 = vpop.f32.mrf.mxu2  ;;  %v1252_v3 = vpop.f32.mrf.mxu3  ;;  %v1510_v5 = vld [vmem:[%s3317_s2 + $0xc0] sm:$0xff] }
 0x3de   :  { %1733 = vtanh.f32 %v1275_v15  ;;  %v1261_v23 = vrot.slane %v1232_v16, 6  ;;  %v1262_v24 = vrot.slane %v1252_v3, 6  ;;  %v1511_v15 = vld [vmem:[%s3317_s2 + $0xc8] sm:$0xff]  ;;  %v1512_v16 = vld [vmem:[%s3317_s2 + $0xd0] sm:$0xff]  ;;  %1562 = vmatpush.msra.mxu0 %v1510_v5  ;;  %v1513_v3 = vld [vmem:[%s3317_s2 + $0xd8] sm:$0xff] }
 0x3df   :  { %1582 = vmatpush.msra.mxu1 %v1511_v15  ;;  %1602 = vmatpush.msra.mxu2 %v1512_v16 }
 0x3e0   :  { %v1269_v27 = vadd.f32 %v1261_v23, %v1109_v25  ;;  %v1270_v28 = vadd.f32 %v1262_v24, %v1110_v26  ;;  %1622 = vmatpush.msra.mxu3 %v1513_v3  ;;  %v1506_v23 = vld [vmem:[%s3317_s2 + $0xa0] sm:$0xff]  ;;  %v1507_v24 = vld [vmem:[%s3317_s2 + $0xa8] sm:$0xff]  ;;  %v1508_v25 = vld [vmem:[%s3317_s2 + $0xb0] sm:$0xff] }
 0x3e1   :  { %1563 = vmatpush.msra.mxu0 %v1506_v23  ;;  %1583 = vmatpush.msra.mxu1 %v1507_v24  ;;  %v1509_v26 = vld [vmem:[%s3317_s2 + $0xb8] sm:$0xff]  ;;  %v1482_v23 = vld [vmem:[#allocation2 + $0x8] sm:$0xc0]  ;;  %v1483_v24 = vld [vmem:[#allocation2 + $0x20] sm:$0xc0] }
 0x3e2   :  { %1735 = vtanh.f32 %v1269_v27  ;;  %v1280_v29 = vmul.f32 0.5, %v1270_v28  ;;  %1603 = vmatpush.msra.mxu2 %v1508_v25  ;;  %1623 = vmatpush.msra.mxu3 %v1509_v26  ;;  %v1502_v27 = vld [vmem:[%s3317_s2 + $0x80] sm:$0xff]  ;;  %v1503_v28 = vld [vmem:[%s3317_s2 + $0x88] sm:$0xff] }
 0x3e3   :  { %v1732_v31 = vpop.eup %1731  ;;  %1564 = vmatpush.msra.mxu0 %v1502_v27  ;;  %1584 = vmatpush.msra.mxu1 %v1503_v28 }
 0x3e4   :  { %v1734_v33 = vpop.eup %1733  ;;  %v1273_v34 = vadd.f32 1.0, %v1732_v31  ;;  %1737 = vtanh.f32 %v1280_v29  ;;  %v1504_v29 = vld [vmem:[%s3317_s2 + $0x90] sm:$0xff]  ;;  %v1505_v31 = vld [vmem:[%s3317_s2 + $0x98] sm:$0xff] }
 0x3e5   :  { %v1277_v35 = vadd.f32 1.0, %v1734_v33  ;;  %1604 = vmatpush.msra.mxu2 %v1504_v29  ;;  %1624 = vmatpush.msra.mxu3 %v1505_v31  ;;  %v1498_v33 = vld [vmem:[%s3317_s2 + $0x60] sm:$0xff] }
 0x3e6   :  { %v1274_v36 = vmul.f32 0.5, %v1273_v34  ;;  %v1499_v34 = vld [vmem:[%s3317_s2 + $0x68] sm:$0xff]  ;;  %1565 = vmatpush.msra.mxu0 %v1498_v33 }
 0x3e7   :  { %v1278_v37 = vmul.f32 0.5, %v1277_v35  ;;  %v1500_v35 = vld [vmem:[%s3317_s2 + $0x70] sm:$0xff]  ;;  %1585 = vmatpush.msra.mxu1 %v1499_v34 }
 0x3e8   :  { %v1736_v39 = vpop.eup %1735  ;;  %1605 = vmatpush.msra.mxu2 %v1500_v35  ;;  %v1484_v35 = vld [vmem:[#allocation2 + $0x28] sm:$0xc0] }
 0x3e9   :  { %v1287_v40 = vmul.f32 %v1285_v38, %v1278_v37  ;;  %v1288_v41 = vmul.f32 %v1736_v39, %v1274_v36  ;;  %v1501_v36 = vld [vmem:[%s3317_s2 + $0x78] sm:$0xff]  ;;  %v1494_v37 = vld [vmem:[%s3317_s2 + $0x40] sm:$0xff]  ;;  %v1495_v38 = vld [vmem:[%s3317_s2 + $0x48] sm:$0xff] }
 0x3ea   :  { %v1738_v42 = vpop.eup %1737  ;;  %1625 = vmatpush.msra.mxu3 %v1501_v36  ;;  %v1496_v39 = vld [vmem:[%s3317_s2 + $0x50] sm:$0xff]  ;;  %1566 = vmatpush.msra.mxu0 %v1494_v37  ;;  %v1485_v36 = vld [vmem:[#allocation2 + $0x38] sm:$0xc0] }
 0x3eb   :  { %v3108_v43 = vadd.f32 %v1288_v41, %v1287_v40  ;;  %v1282_v44 = vadd.f32 1.0, %v1738_v42  ;;  %1586 = vmatpush.msra.mxu1 %v1495_v38  ;;  %v1497_v40 = vld [vmem:[%s3317_s2 + $0x58] sm:$0xff]  ;;  %1606 = vmatpush.msra.mxu2 %v1496_v39  ;;  %v1490_v41 = vld [vmem:[%s3317_s2 + $0x20] sm:$0xff]  ;;  %v1491_v42 = vld [vmem:[%s3317_s2 + $0x28] sm:$0xff] }
 0x3ec   :  { %1626 = vmatpush.msra.mxu3 %v1497_v40  ;;  %1567 = vmatpush.msra.mxu0 %v1490_v41 }
 0x3ed   :  { %1739 = vtanh.f32 %v3108_v43  ;;  %v1283_v45 = vmul.f32 0.5, %v1282_v44  ;;  %v1492_v44 = vld [vmem:[%s3317_s2 + $0x30] sm:$0xff]  ;;  %1587 = vmatpush.msra.mxu1 %v1491_v42  ;;  %v1474_v13 = vrot.slane %v3108_v43, 6 }
 0x3ee   :  { %1607 = vmatpush.msra.mxu2 %v1492_v44 }
 0x3ef   :  { %1588 = vmatpush.msra.mxu1 %v1487_v50 }
 0x3f0   :  { %1608 = vmatpush.msra.mxu2 %v1488_v51 }
 0x3f3   :  { %v1740_v46 = vpop.eup %1739 }
 0x3f4   :  { %v1291_v47 = vmul.f32 %v1740_v46, %v1283_v45  ;;  %v1493_v45 = vld [vmem:[%s3317_s2 + $0x38] sm:$0xff] }
 0x3f5   :  { %1627 = vmatpush.msra.mxu3 %v1493_v45 }
 0x3f6   :  { %1292 = vst [vmem:[%s3320_s4 + $0x8] sm:$0xc] %v1291_v47  ;;  %v1362_v48 = vrot.slane %v1291_v47, 2 }
 0x3f7   :  { %1628 = vmatpush.msra.mxu3 %v1489_v54 }
 0x3f8   :  { %1380 = vmatmul.f32.vlgmr.msrb.gmra.mxu0 %v1362_v48  ;;  %1400 = vmatmul.f32.vlgmr.msrb.gmra.mxu1 %v1362_v48 }
 0x3f9   :  { %1420 = vmatmul.f32.vlgmr.msrb.gmra.mxu2 %v1362_v48  ;;  %1440 = vmatmul.f32.vlgmr.msrb.gmra.mxu3 %v1362_v48  ;;  %v1486_v48 = vld [vmem:[%s3317_s2] sm:$0xff] }
 0x3fa   :  { %1568 = vmatpush.msra.mxu0 %v1486_v48 }
 0x475   :  { %v1381_v46 = vpop.f32.mrf.mxu0  ;;  %v1401_v47 = vpop.f32.mrf.mxu1 }
 0x476   :  { %v1448_v52 = vrot.slane %v1381_v46, 4  ;;  %v1449_v53 = vrot.slane %v1401_v47, 4 }
 0x478   :  { %v1456_v57 = vadd.f32 %v1448_v52, %v1293_v55  ;;  %v1457_v58 = vadd.f32 %v1449_v53, %v1294_v56 }
 0x47a   :  { %v1460_v60 = vmul.f32 0.5, %v1456_v57  ;;  %v1464_v61 = vmul.f32 0.5, %v1457_v58 }
 0x47c   :  { %1741 = vtanh.f32 %v1460_v60  ;;  %v1421_v62 = vpop.f32.mrf.mxu2  ;;  %v1441_v63 = vpop.f32.mrf.mxu3 }
 0x47d   :  { %1743 = vtanh.f32 %v1464_v61  ;;  %v1450_v32 = vrot.slane %v1421_v62, 4  ;;  %v1451_v49 = vrot.slane %v1441_v63, 4 }
 0x47f   :  { %v1458_v1 = vadd.f32 %v1450_v32, %v1295_v59  ;;  %v1459_v2 = vadd.f32 %v1451_v49, %v1296_v0 }
 0x481   :  { %1745 = vtanh.f32 %v1458_v1  ;;  %v1469_v4 = vmul.f32 0.5, %v1459_v2 }
 0x482   :  { %v1742_v19 = vpop.eup %1741 }
 0x483   :  { %v1744_v22 = vpop.eup %1743  ;;  %v1462_v18 = vadd.f32 1.0, %v1742_v19  ;;  %1747 = vtanh.f32 %v1469_v4 }
 0x484   :  { %v1466_v14 = vadd.f32 1.0, %v1744_v22 }
 0x485   :  { %v1463_v20 = vmul.f32 0.5, %v1462_v18 }
 0x486   :  { %v1467_v12 = vmul.f32 0.5, %v1466_v14 }
 0x487   :  { %v1746_v11 = vpop.eup %1745 }
 0x488   :  { %v1476_v7 = vmul.f32 %v1474_v13, %v1467_v12  ;;  %v1477_v8 = vmul.f32 %v1746_v11, %v1463_v20 }
 0x489   :  { %v1748_v17 = vpop.eup %1747 }
 0x48a   :  { %v1478_v21 = vadd.f32 %v1477_v8, %v1476_v7  ;;  %v1471_v30 = vadd.f32 1.0, %v1748_v17 }
 0x48c   :  { %1749 = vtanh.f32 %v1478_v21  ;;  %v1472_v9 = vmul.f32 0.5, %v1471_v30  ;;  %v1663_v47 = vrot.slane %v1478_v21, 6 }
 0x492   :  { %v1750_v10 = vpop.eup %1749 }
 0x493   :  { %v1480_v6 = vmul.f32 %v1750_v10, %v1472_v9 }
 0x495   :  { %1481 = vst [vmem:[%s3320_s4 + $0x8] sm:$0x30] %v1480_v6  ;;  %v1551_v5 = vrot.slane %v1480_v6, 4 }
 0x497   :  { %1569 = vmatmul.f32.vlgmr.msra.gmra.mxu0 %v1551_v5  ;;  %1589 = vmatmul.f32.vlgmr.msra.gmra.mxu1 %v1551_v5 }
 0x498   :  { %1609 = vmatmul.f32.vlgmr.msra.gmra.mxu2 %v1551_v5  ;;  %1629 = vmatmul.f32.vlgmr.msra.gmra.mxu3 %v1551_v5 }
 0x514   :  { %v1570_v43 = vpop.f32.mrf.mxu0  ;;  %v1590_v15 = vpop.f32.mrf.mxu1 }
 0x515   :  { %v1637_v16 = vrot.slane %v1570_v43, 2  ;;  %v1638_v3 = vrot.slane %v1590_v15, 2 }
 0x517   :  { %v1645_v25 = vadd.f32 %v1637_v16, %v1482_v23  ;;  %v1646_v26 = vadd.f32 %v1638_v3, %v1483_v24 }
 0x519   :  { %v1649_v27 = vmul.f32 0.5, %v1645_v25  ;;  %v1653_v28 = vmul.f32 0.5, %v1646_v26 }
 0x51b   :  { %1751 = vtanh.f32 %v1649_v27  ;;  %v1610_v29 = vpop.f32.mrf.mxu2  ;;  %v1630_v31 = vpop.f32.mrf.mxu3 }
 0x51c   :  { %1753 = vtanh.f32 %v1653_v28  ;;  %v1639_v33 = vrot.slane %v1610_v29, 2  ;;  %v1640_v34 = vrot.slane %v1630_v31, 2 }
 0x51e   :  { %v1647_v37 = vadd.f32 %v1639_v33, %v1484_v35  ;;  %v1648_v38 = vadd.f32 %v1640_v34, %v1485_v36 }
 0x520   :  { %1755 = vtanh.f32 %v1647_v37  ;;  %v1658_v39 = vmul.f32 0.5, %v1648_v38 }
 0x521   :  { %v1752_v40 = vpop.eup %1751 }
 0x522   :  { %v1754_v41 = vpop.eup %1753  ;;  %v1651_v42 = vadd.f32 1.0, %v1752_v40  ;;  %1757 = vtanh.f32 %v1658_v39 }
 0x523   :  { %v1655_v44 = vadd.f32 1.0, %v1754_v41 }
 0x524   :  { %v1652_v45 = vmul.f32 0.5, %v1651_v42 }
 0x525   :  { %v1656_v46 = vmul.f32 0.5, %v1655_v44 }
 0x526   :  { %v1756_v48 = vpop.eup %1755 }
 0x527   :  { %v1665_v50 = vmul.f32 %v1663_v47, %v1656_v46  ;;  %v1666_v51 = vmul.f32 %v1756_v48, %v1652_v45 }
 0x528   :  { %v1758_v52 = vpop.eup %1757 }
 0x529   :  { %v1667_v53 = vadd.f32 %v1666_v51, %v1665_v50  ;;  %v1660_v54 = vadd.f32 1.0, %v1758_v52 }
 0x52b   :  { %1759 = vtanh.f32 %v1667_v53  ;;  %1671 = vst [vmem:[%s3321_s5 - $0x6] sm:$0xc0] %v1667_v53  ;;  %v1661_v55 = vmul.f32 0.5, %v1660_v54 }
 0x531   :  { %v1760_v56 = vpop.eup %1759 }
 0x532   :  { %v1669_v57 = vmul.f32 %v1760_v56, %v1661_v55 }
 0x534   :  { %1670 = vst [vmem:[%s3320_s4 + $0x8] sm:$0xc0] %v1669_v57 }

</bundles_post_ra>
